<compile_context>
chip_gen: v7x
topology: tpu7x:2x2x1
jax: 0.10.0
libtpu: 0.0.40
codegen_flags: <defaults>
</compile_context>

<pallas_src>
import jax
import jax.numpy as jnp
from jax.experimental import pallas as pl
from jax.experimental.pallas import tpu as pltpu

LN_EPS = 1e-5

# Feature dims of the 9 Linear layers in MeshMap (LayerNorm after the first 8,
# tanh after the last):  2 -> 8 -> 32 -> 128 -> 192 -> 384 -> 768 -> 192 -> 48 -> 3
DIMS = [2, 2 * 4, 2 * 16, 2 * 64, 3 * 64, 3 * 128, 3 * 256, 3 * 64, 3 * 16, 3]
N_LAYERS = len(DIMS) - 1          # 9 linear layers
N_LN_LAYERS = N_LAYERS - 1        # first 8 layers are followed by LayerNorm
OUT_DIM = DIMS[-1]                # 3
OUT_PAD = 128                     # final weight zero-padded to 128 MXU lanes
SMALL_K = 8                       # fan-in <= this -> VPU broadcast FMA, not MXU


def _round_up(x, m):
    return ((x + m - 1) // m) * m


def _choose_row_tile(rows, tm_max=1024, align=256):
    """Ceil-split rows into <= tm_max chunks, round the chunk up to `align`
    (8 for tiny inputs) so the last tile is never nearly empty."""
    n_tiles = max(1, -(-rows // tm_max))
    tm = -(-rows // n_tiles)
    tm = _round_up(tm, align if tm >= align else 8)
    return tm, n_tiles


def _vmem_limit_bytes():
    """3/4 of per-core VMEM (96 MiB on v5e/v6e, 48 MiB on v7x); 48 MiB fallback."""
    try:
        cap = int(pltpu.get_tpu_info().vmem_capacity_bytes)
    except Exception:
        cap = 64 * 1024 * 1024
    return min(cap * 3 // 4, 100 * 1024 * 1024)


def _ndmap_kernel(x_ref, *refs):
    """Fused MeshMap forward for one (primitive, row-tile) grid cell.

    refs = [w0, b0, w1, b1, ..., w8, b8, o_ref]
    Weights are bf16, shape (in, out) with the previous LayerNorm's gamma
    folded into the rows; biases are f32 (1, out) with beta @ W folded in.
    The stacked primitive axis is squeezed away by the BlockSpecs.
    """
    o_ref = refs[-1]
    params = refs[:-1]

    h = x_ref[...].astype(jnp.float32)            # (tm, 2)
    for li in range(N_LAYERS):
        w, b = params[2 * li], params[2 * li + 1]
        fin = DIMS[li]

        # ---- Linear ----
        if fin <= SMALL_K:
            # Tiny-K matmuls are pure MXU pipeline overhead; run on the VPU.
            wf = w[...].astype(jnp.float32)
            z = b[...]
            for k in range(fin):
                z = z + h[:, k:k + 1] * wf[k:k + 1, :]
        else:
            z = jnp.dot(h, w[...], preferred_element_type=jnp.float32) + b[...]

        if li < N_LN_LAYERS:
            # ---- LayerNorm (affine folded into the next layer at pack time) ----
            fout = DIMS[li + 1]
            inv_d = 1.0 / float(fout)
            mu = jnp.sum(z, axis=-1, keepdims=True) * inv_d
            d = z - mu
            var = jnp.sum(d * d, axis=-1, keepdims=True) * inv_d
            hn = d * jax.lax.rsqrt(var + LN_EPS)
            # Fuse the bf16 cast into the normalize when the next layer is MXU.
            h = hn.astype(jnp.bfloat16) if DIMS[li + 1] > SMALL_K else hn
        else:
            # ---- Final layer: tanh, store only the 3 real output columns ----
            o_ref[...] = jnp.tanh(z[:, :OUT_DIM]).astype(o_ref.dtype)


def nd_map_forward(x, stacked_params, *, tm_max=1024):
    """ND_Map.forward: x (B, N, 2) -> (P*B, N, 3); all primitives fused into
    one pallas_call over a (primitive, row_tile) grid."""
    P = stacked_params[0].shape[0]
    B, N, Din = x.shape
    assert Din == DIMS[0]
    rows = B * N

    tm, n_tiles = _choose_row_tile(rows, tm_max)
    rows_pad = tm * n_tiles

    x2 = x.reshape(rows, Din).astype(jnp.float32)
    if rows_pad != rows:
        x2 = jnp.pad(x2, ((0, rows_pad - rows), (0, 0)))

    # x: tiled along rows, replicated across primitives.
    in_specs = [pl.BlockSpec((tm, Din), lambda p, i: (i, 0))]
    # Params: full-extent blocks, indexed by primitive (leading axis squeezed).
    # Grid order (P outer, row tiles inner) keeps one primitive's weights
    # resident across all of its row tiles -> weights DMA'd only P times.
    for arr in stacked_params:
        in_specs.append(
            pl.BlockSpec((None,) + arr.shape[1:], lambda p, i: (p, 0, 0)))

    out_specs = pl.BlockSpec((None, tm, OUT_DIM), lambda p, i: (p, i, 0))

    out = pl.pallas_call(
        _ndmap_kernel,
        out_shape=jax.ShapeDtypeStruct((P, rows_pad, OUT_DIM), jnp.float32),
        grid_spec=pltpu.PrefetchScalarGridSpec(
            num_scalar_prefetch=0,
            grid=(P, n_tiles),
            in_specs=in_specs,
            out_specs=out_specs,
        ),
        compiler_params=pltpu.CompilerParams(
            dimension_semantics=("parallel", "parallel"),
            vmem_limit_bytes=_vmem_limit_bytes(),
        ),
    )(x2, *stacked_params)

    if rows_pad != rows:
        out = out[:, :rows, :]
    return out.reshape(P * B, N, OUT_DIM)


def init_meshmap_params(key):
    """One MeshMap's parameters (f32, PyTorch-style init), flat list:
       layers 0..7: W (in,out), b (1,out), gamma (1,out), beta (1,out)
       layer 8:     W (in,out), b (1,out)"""
    params = []
    keys = jax.random.split(key, N_LAYERS)
    for li in range(N_LAYERS):
        fin, fout = DIMS[li], DIMS[li + 1]
        kw, kb = jax.random.split(keys[li])
        bound = 1.0 / (fin ** 0.5)
        w = jax.random.uniform(kw, (fin, fout), jnp.float32, -bound, bound)
        b = jax.random.uniform(kb, (1, fout), jnp.float32, -bound, bound)
        params.extend([w, b])
        if li < N_LN_LAYERS:
            params.extend([jnp.ones((1, fout), jnp.float32),
                           jnp.zeros((1, fout), jnp.float32)])
    return params


def pack_nd_map_params(per_primitive_params):
    """Fold each LayerNorm's gamma/beta into the following layer's weight/bias,
    pad the final 48->3 weight to 128 output columns, cast weights to bf16,
    and stack everything across primitives (leading P axis).

    Returns a flat list [w0, b0, w1, b1, ..., w8, b8] of stacked arrays."""
    folded_per_prim = []
    for prm in per_primitive_params:
        folded = []
        for li in range(N_LAYERS):
            base = 4 * li
            w = prm[base].astype(jnp.float32)          # (fin, fout)
            b = prm[base + 1].astype(jnp.float32)      # (1, fout)
            if li > 0:
                g = prm[4 * (li - 1) + 2].reshape(-1)          # (fin,)
                be = prm[4 * (li - 1) + 3].reshape(1, -1)      # (1, fin)
                b = be @ w + b          # fold beta (uses un-scaled W)
                w = w * g[:, None]      # fold gamma into W rows
            if li == N_LAYERS - 1:
                pad = OUT_PAD - OUT_DIM
                w = jnp.pad(w, ((0, 0), (0, pad)))
                b = jnp.pad(b, ((0, 0), (0, pad)))
            folded.append(w.astype(jnp.bfloat16))
            folded.append(b.astype(jnp.float32))
        folded_per_prim.append(folded)

    n_params = len(folded_per_prim[0])
    P = len(folded_per_prim)
    return [jnp.stack([folded_per_prim[p][j] for p in range(P)], axis=0)
            for j in range(n_params)]


def meshmap_reference(x, params):
    """Pure-JAX f32 reference of the original (unfolded) MeshMap; weights are
    rounded through bf16 to match the kernel's weight precision."""
    B, N, _ = x.shape
    h = x.reshape(B * N, DIMS[0]).astype(jnp.float32)
    idx = 0
    for li in range(N_LAYERS):
        w = params[idx].astype(jnp.bfloat16).astype(jnp.float32)
        b = params[idx + 1]
        h = h @ w + b
        if li < N_LN_LAYERS:
            g, be = params[idx + 2], params[idx + 3]
            mu = jnp.mean(h, axis=-1, keepdims=True)
            var = jnp.mean(jnp.square(h - mu), axis=-1, keepdims=True)
            h = (h - mu) * jax.lax.rsqrt(var + LN_EPS) * g + be
            idx += 4
        else:
            idx += 2
    return jnp.tanh(h).reshape(B, N, DIMS[-1])


if __name__ == "__main__":
    key = jax.random.PRNGKey(0)
    kx, kp = jax.random.split(key)

    # Small shapes: batch=2, num_points=8, 2-D input coords, 2 primitives.
    B, N = 2, 8
    nb_primitives = 2
    x = jax.random.normal(kx, (B, N, DIMS[0]), jnp.float32)

    per_prim = [init_meshmap_params(k) for k in jax.random.split(kp, nb_primitives)]
    packed = pack_nd_map_params(per_prim)

    y = nd_map_forward(x, packed)
    y = jax.block_until_ready(y)

    assert y.shape == (nb_primitives * B, N, DIMS[-1]), y.shape
    assert bool(jnp.all(jnp.isfinite(y)))
    assert bool(jnp.all(jnp.abs(y) <= 1.0))  # tanh output range

    # Cross-check against the pure-JAX reference (bf16-matmul tolerance).
    ref = jnp.concatenate([meshmap_reference(x, p) for p in per_prim], axis=0)
    max_err = float(jnp.max(jnp.abs(y - ref)))
    assert max_err < 5e-2, f"max abs error vs reference: {max_err}"

    print("KERNEL_OK")
</pallas_src>

<mosaic_0001>
module attributes {stable_mosaic.version = 11 : i64} {
  func.func @_ndmap_kernel(%arg0: i32, %arg1: i32, %arg2: memref<16x2xf32, #tpu.memory_space<vmem>>, %arg3: memref<1x2x8xbf16, #tpu.memory_space<vmem>>, %arg4: memref<1x1x8xf32, #tpu.memory_space<vmem>>, %arg5: memref<1x8x32xbf16, #tpu.memory_space<vmem>>, %arg6: memref<1x1x32xf32, #tpu.memory_space<vmem>>, %arg7: memref<1x32x128xbf16, #tpu.memory_space<vmem>>, %arg8: memref<1x1x128xf32, #tpu.memory_space<vmem>>, %arg9: memref<1x128x192xbf16, #tpu.memory_space<vmem>>, %arg10: memref<1x1x192xf32, #tpu.memory_space<vmem>>, %arg11: memref<1x192x384xbf16, #tpu.memory_space<vmem>>, %arg12: memref<1x1x384xf32, #tpu.memory_space<vmem>>, %arg13: memref<1x384x768xbf16, #tpu.memory_space<vmem>>, %arg14: memref<1x1x768xf32, #tpu.memory_space<vmem>>, %arg15: memref<1x768x192xbf16, #tpu.memory_space<vmem>>, %arg16: memref<1x1x192xf32, #tpu.memory_space<vmem>>, %arg17: memref<1x192x48xbf16, #tpu.memory_space<vmem>>, %arg18: memref<1x1x48xf32, #tpu.memory_space<vmem>>, %arg19: memref<1x48x128xbf16, #tpu.memory_space<vmem>>, %arg20: memref<1x1x128xf32, #tpu.memory_space<vmem>>, %arg21: memref<1x16x3xf32, #tpu.memory_space<vmem>>) attributes {dimension_semantics = [#tpu.dimension_semantics<parallel>, #tpu.dimension_semantics<parallel>], iteration_bounds = array<i64: 2, 1>, scalar_prefetch = 0 : i64, scratch_operands = 0 : i64, tpu.core_type = #tpu.core_type<tc>, window_params = [{transform_indices = @transform_0, window_bounds = array<i64: 16, 2>}, {transform_indices = @transform_1, window_bounds = array<i64: 1, 2, 8>}, {transform_indices = @transform_2, window_bounds = array<i64: 1, 1, 8>}, {transform_indices = @transform_3, window_bounds = array<i64: 1, 8, 32>}, {transform_indices = @transform_4, window_bounds = array<i64: 1, 1, 32>}, {transform_indices = @transform_5, window_bounds = array<i64: 1, 32, 128>}, {transform_indices = @transform_6, window_bounds = array<i64: 1, 1, 128>}, {transform_indices = @transform_7, window_bounds = array<i64: 1, 128, 192>}, {transform_indices = @transform_8, window_bounds = array<i64: 1, 1, 192>}, {transform_indices = @transform_9, window_bounds = array<i64: 1, 192, 384>}, {transform_indices = @transform_10, window_bounds = array<i64: 1, 1, 384>}, {transform_indices = @transform_11, window_bounds = array<i64: 1, 384, 768>}, {transform_indices = @transform_12, window_bounds = array<i64: 1, 1, 768>}, {transform_indices = @transform_13, window_bounds = array<i64: 1, 768, 192>}, {transform_indices = @transform_14, window_bounds = array<i64: 1, 1, 192>}, {transform_indices = @transform_15, window_bounds = array<i64: 1, 192, 48>}, {transform_indices = @transform_16, window_bounds = array<i64: 1, 1, 48>}, {transform_indices = @transform_17, window_bounds = array<i64: 1, 48, 128>}, {transform_indices = @transform_18, window_bounds = array<i64: 1, 1, 128>}, {transform_indices = @transform_19, window_bounds = array<i64: 1, 16, 3>}]} {
    %c0 = arith.constant 0 : index
    %c0_0 = arith.constant 0 : index
    %0 = vector.load %arg2[%c0, %c0_0] : memref<16x2xf32, #tpu.memory_space<vmem>>, vector<16x2xf32>
    %c0_1 = arith.constant 0 : index
    %c0_2 = arith.constant 0 : index
    %c0_3 = arith.constant 0 : index
    %1 = vector.load %arg3[%c0_1, %c0_2, %c0_3] : memref<1x2x8xbf16, #tpu.memory_space<vmem>>, vector<1x2x8xbf16>
    %2 = vector.shape_cast %1 : vector<1x2x8xbf16> to vector<2x8xbf16>
    %3 = arith.extf %2 : vector<2x8xbf16> to vector<2x8xf32>
    %c0_4 = arith.constant 0 : index
    %c0_5 = arith.constant 0 : index
    %c0_6 = arith.constant 0 : index
    %4 = vector.load %arg4[%c0_4, %c0_5, %c0_6] : memref<1x1x8xf32, #tpu.memory_space<vmem>>, vector<1x1x8xf32>
    %5 = vector.shape_cast %4 : vector<1x1x8xf32> to vector<1x8xf32>
    %6 = vector.extract_strided_slice %0 {offsets = [0, 0], sizes = [16, 1], strides = [1, 1]} : vector<16x2xf32> to vector<16x1xf32>
    %7 = vector.extract_strided_slice %3 {offsets = [0, 0], sizes = [1, 8], strides = [1, 1]} : vector<2x8xf32> to vector<1x8xf32>
    %8 = vector.broadcast %6 : vector<16x1xf32> to vector<16x8xf32>
    %9 = vector.broadcast %7 : vector<1x8xf32> to vector<16x8xf32>
    %10 = arith.mulf %8, %9 : vector<16x8xf32>
    %11 = vector.broadcast %5 : vector<1x8xf32> to vector<16x8xf32>
    %12 = arith.addf %11, %10 : vector<16x8xf32>
    %13 = vector.extract_strided_slice %0 {offsets = [0, 1], sizes = [16, 1], strides = [1, 1]} : vector<16x2xf32> to vector<16x1xf32>
    %14 = vector.extract_strided_slice %3 {offsets = [1, 0], sizes = [1, 8], strides = [1, 1]} : vector<2x8xf32> to vector<1x8xf32>
    %15 = vector.broadcast %13 : vector<16x1xf32> to vector<16x8xf32>
    %16 = vector.broadcast %14 : vector<1x8xf32> to vector<16x8xf32>
    %17 = arith.mulf %15, %16 : vector<16x8xf32>
    %18 = arith.addf %12, %17 : vector<16x8xf32>
    %cst = arith.constant dense<0.000000e+00> : vector<16xf32>
    %19 = vector.multi_reduction <add>, %18, %cst [1] : vector<16x8xf32> to vector<16xf32>
    %20 = vector.shape_cast %19 : vector<16xf32> to vector<16x1xf32>
    %cst_7 = arith.constant 1.250000e-01 : f32
    %21 = vector.broadcast %cst_7 : f32 to vector<16x1xf32>
    %22 = arith.mulf %20, %21 : vector<16x1xf32>
    %23 = vector.broadcast %22 : vector<16x1xf32> to vector<16x8xf32>
    %24 = arith.subf %18, %23 : vector<16x8xf32>
    %25 = arith.mulf %24, %24 : vector<16x8xf32>
    %cst_8 = arith.constant dense<0.000000e+00> : vector<16xf32>
    %26 = vector.multi_reduction <add>, %25, %cst_8 [1] : vector<16x8xf32> to vector<16xf32>
    %27 = vector.shape_cast %26 : vector<16xf32> to vector<16x1xf32>
    %cst_9 = arith.constant 1.250000e-01 : f32
    %28 = vector.broadcast %cst_9 : f32 to vector<16x1xf32>
    %29 = arith.mulf %27, %28 : vector<16x1xf32>
    %cst_10 = arith.constant 9.99999974E-6 : f32
    %30 = vector.broadcast %cst_10 : f32 to vector<16x1xf32>
    %31 = arith.addf %29, %30 : vector<16x1xf32>
    %32 = math.rsqrt %31 : vector<16x1xf32>
    %33 = vector.broadcast %32 : vector<16x1xf32> to vector<16x8xf32>
    %34 = arith.mulf %24, %33 : vector<16x8xf32>
    %c0_11 = arith.constant 0 : index
    %c0_12 = arith.constant 0 : index
    %c0_13 = arith.constant 0 : index
    %35 = vector.load %arg5[%c0_11, %c0_12, %c0_13] : memref<1x8x32xbf16, #tpu.memory_space<vmem>>, vector<1x8x32xbf16>
    %36 = vector.shape_cast %35 : vector<1x8x32xbf16> to vector<8x32xbf16>
    %37 = arith.extf %36 : vector<8x32xbf16> to vector<8x32xf32>
    %c0_14 = arith.constant 0 : index
    %c0_15 = arith.constant 0 : index
    %c0_16 = arith.constant 0 : index
    %38 = vector.load %arg6[%c0_14, %c0_15, %c0_16] : memref<1x1x32xf32, #tpu.memory_space<vmem>>, vector<1x1x32xf32>
    %39 = vector.shape_cast %38 : vector<1x1x32xf32> to vector<1x32xf32>
    %40 = vector.extract_strided_slice %34 {offsets = [0, 0], sizes = [16, 1], strides = [1, 1]} : vector<16x8xf32> to vector<16x1xf32>
    %41 = vector.extract_strided_slice %37 {offsets = [0, 0], sizes = [1, 32], strides = [1, 1]} : vector<8x32xf32> to vector<1x32xf32>
    %42 = vector.broadcast %40 : vector<16x1xf32> to vector<16x32xf32>
    %43 = vector.broadcast %41 : vector<1x32xf32> to vector<16x32xf32>
    %44 = arith.mulf %42, %43 : vector<16x32xf32>
    %45 = vector.broadcast %39 : vector<1x32xf32> to vector<16x32xf32>
    %46 = arith.addf %45, %44 : vector<16x32xf32>
    %47 = vector.extract_strided_slice %34 {offsets = [0, 1], sizes = [16, 1], strides = [1, 1]} : vector<16x8xf32> to vector<16x1xf32>
    %48 = vector.extract_strided_slice %37 {offsets = [1, 0], sizes = [1, 32], strides = [1, 1]} : vector<8x32xf32> to vector<1x32xf32>
    %49 = vector.broadcast %47 : vector<16x1xf32> to vector<16x32xf32>
    %50 = vector.broadcast %48 : vector<1x32xf32> to vector<16x32xf32>
    %51 = arith.mulf %49, %50 : vector<16x32xf32>
    %52 = arith.addf %46, %51 : vector<16x32xf32>
    %53 = vector.extract_strided_slice %34 {offsets = [0, 2], sizes = [16, 1], strides = [1, 1]} : vector<16x8xf32> to vector<16x1xf32>
    %54 = vector.extract_strided_slice %37 {offsets = [2, 0], sizes = [1, 32], strides = [1, 1]} : vector<8x32xf32> to vector<1x32xf32>
    %55 = vector.broadcast %53 : vector<16x1xf32> to vector<16x32xf32>
    %56 = vector.broadcast %54 : vector<1x32xf32> to vector<16x32xf32>
    %57 = arith.mulf %55, %56 : vector<16x32xf32>
    %58 = arith.addf %52, %57 : vector<16x32xf32>
    %59 = vector.extract_strided_slice %34 {offsets = [0, 3], sizes = [16, 1], strides = [1, 1]} : vector<16x8xf32> to vector<16x1xf32>
    %60 = vector.extract_strided_slice %37 {offsets = [3, 0], sizes = [1, 32], strides = [1, 1]} : vector<8x32xf32> to vector<1x32xf32>
    %61 = vector.broadcast %59 : vector<16x1xf32> to vector<16x32xf32>
    %62 = vector.broadcast %60 : vector<1x32xf32> to vector<16x32xf32>
    %63 = arith.mulf %61, %62 : vector<16x32xf32>
    %64 = arith.addf %58, %63 : vector<16x32xf32>
    %65 = vector.extract_strided_slice %34 {offsets = [0, 4], sizes = [16, 1], strides = [1, 1]} : vector<16x8xf32> to vector<16x1xf32>
    %66 = vector.extract_strided_slice %37 {offsets = [4, 0], sizes = [1, 32], strides = [1, 1]} : vector<8x32xf32> to vector<1x32xf32>
    %67 = vector.broadcast %65 : vector<16x1xf32> to vector<16x32xf32>
    %68 = vector.broadcast %66 : vector<1x32xf32> to vector<16x32xf32>
    %69 = arith.mulf %67, %68 : vector<16x32xf32>
    %70 = arith.addf %64, %69 : vector<16x32xf32>
    %71 = vector.extract_strided_slice %34 {offsets = [0, 5], sizes = [16, 1], strides = [1, 1]} : vector<16x8xf32> to vector<16x1xf32>
    %72 = vector.extract_strided_slice %37 {offsets = [5, 0], sizes = [1, 32], strides = [1, 1]} : vector<8x32xf32> to vector<1x32xf32>
    %73 = vector.broadcast %71 : vector<16x1xf32> to vector<16x32xf32>
    %74 = vector.broadcast %72 : vector<1x32xf32> to vector<16x32xf32>
    %75 = arith.mulf %73, %74 : vector<16x32xf32>
    %76 = arith.addf %70, %75 : vector<16x32xf32>
    %77 = vector.extract_strided_slice %34 {offsets = [0, 6], sizes = [16, 1], strides = [1, 1]} : vector<16x8xf32> to vector<16x1xf32>
    %78 = vector.extract_strided_slice %37 {offsets = [6, 0], sizes = [1, 32], strides = [1, 1]} : vector<8x32xf32> to vector<1x32xf32>
    %79 = vector.broadcast %77 : vector<16x1xf32> to vector<16x32xf32>
    %80 = vector.broadcast %78 : vector<1x32xf32> to vector<16x32xf32>
    %81 = arith.mulf %79, %80 : vector<16x32xf32>
    %82 = arith.addf %76, %81 : vector<16x32xf32>
    %83 = vector.extract_strided_slice %34 {offsets = [0, 7], sizes = [16, 1], strides = [1, 1]} : vector<16x8xf32> to vector<16x1xf32>
    %84 = vector.extract_strided_slice %37 {offsets = [7, 0], sizes = [1, 32], strides = [1, 1]} : vector<8x32xf32> to vector<1x32xf32>
    %85 = vector.broadcast %83 : vector<16x1xf32> to vector<16x32xf32>
    %86 = vector.broadcast %84 : vector<1x32xf32> to vector<16x32xf32>
    %87 = arith.mulf %85, %86 : vector<16x32xf32>
    %88 = arith.addf %82, %87 : vector<16x32xf32>
    %cst_17 = arith.constant dense<0.000000e+00> : vector<16xf32>
    %89 = vector.multi_reduction <add>, %88, %cst_17 [1] : vector<16x32xf32> to vector<16xf32>
    %90 = vector.shape_cast %89 : vector<16xf32> to vector<16x1xf32>
    %cst_18 = arith.constant 3.125000e-02 : f32
    %91 = vector.broadcast %cst_18 : f32 to vector<16x1xf32>
    %92 = arith.mulf %90, %91 : vector<16x1xf32>
    %93 = vector.broadcast %92 : vector<16x1xf32> to vector<16x32xf32>
    %94 = arith.subf %88, %93 : vector<16x32xf32>
    %95 = arith.mulf %94, %94 : vector<16x32xf32>
    %cst_19 = arith.constant dense<0.000000e+00> : vector<16xf32>
    %96 = vector.multi_reduction <add>, %95, %cst_19 [1] : vector<16x32xf32> to vector<16xf32>
    %97 = vector.shape_cast %96 : vector<16xf32> to vector<16x1xf32>
    %cst_20 = arith.constant 3.125000e-02 : f32
    %98 = vector.broadcast %cst_20 : f32 to vector<16x1xf32>
    %99 = arith.mulf %97, %98 : vector<16x1xf32>
    %cst_21 = arith.constant 9.99999974E-6 : f32
    %100 = vector.broadcast %cst_21 : f32 to vector<16x1xf32>
    %101 = arith.addf %99, %100 : vector<16x1xf32>
    %102 = math.rsqrt %101 : vector<16x1xf32>
    %103 = vector.broadcast %102 : vector<16x1xf32> to vector<16x32xf32>
    %104 = arith.mulf %94, %103 : vector<16x32xf32>
    %105 = arith.truncf %104 : vector<16x32xf32> to vector<16x32xbf16>
    %c0_22 = arith.constant 0 : index
    %c0_23 = arith.constant 0 : index
    %c0_24 = arith.constant 0 : index
    %106 = vector.load %arg7[%c0_22, %c0_23, %c0_24] : memref<1x32x128xbf16, #tpu.memory_space<vmem>>, vector<1x32x128xbf16>
    %107 = vector.shape_cast %106 : vector<1x32x128xbf16> to vector<32x128xbf16>
    %cst_25 = arith.constant dense<0.000000e+00> : vector<16x128xf32>
    %108 = tpu.matmul %105, %107, %cst_25 {dimension_numbers = #tpu.dot_dimension_numbers<[1], [0], [0], [1], [0, 0, 1, 1], [], []>} : vector<16x32xbf16>, vector<32x128xbf16>, vector<16x128xf32> -> vector<16x128xf32>
    %c0_26 = arith.constant 0 : index
    %c0_27 = arith.constant 0 : index
    %c0_28 = arith.constant 0 : index
    %109 = vector.load %arg8[%c0_26, %c0_27, %c0_28] : memref<1x1x128xf32, #tpu.memory_space<vmem>>, vector<1x1x128xf32>
    %110 = vector.shape_cast %109 : vector<1x1x128xf32> to vector<1x128xf32>
    %111 = vector.broadcast %110 : vector<1x128xf32> to vector<16x128xf32>
    %112 = arith.addf %108, %111 : vector<16x128xf32>
    %cst_29 = arith.constant dense<0.000000e+00> : vector<16xf32>
    %113 = vector.multi_reduction <add>, %112, %cst_29 [1] : vector<16x128xf32> to vector<16xf32>
    %114 = vector.shape_cast %113 : vector<16xf32> to vector<16x1xf32>
    %cst_30 = arith.constant 7.812500e-03 : f32
    %115 = vector.broadcast %cst_30 : f32 to vector<16x1xf32>
    %116 = arith.mulf %114, %115 : vector<16x1xf32>
    %117 = vector.broadcast %116 : vector<16x1xf32> to vector<16x128xf32>
    %118 = arith.subf %112, %117 : vector<16x128xf32>
    %119 = arith.mulf %118, %118 : vector<16x128xf32>
    %cst_31 = arith.constant dense<0.000000e+00> : vector<16xf32>
    %120 = vector.multi_reduction <add>, %119, %cst_31 [1] : vector<16x128xf32> to vector<16xf32>
    %121 = vector.shape_cast %120 : vector<16xf32> to vector<16x1xf32>
    %cst_32 = arith.constant 7.812500e-03 : f32
    %122 = vector.broadcast %cst_32 : f32 to vector<16x1xf32>
    %123 = arith.mulf %121, %122 : vector<16x1xf32>
    %cst_33 = arith.constant 9.99999974E-6 : f32
    %124 = vector.broadcast %cst_33 : f32 to vector<16x1xf32>
    %125 = arith.addf %123, %124 : vector<16x1xf32>
    %126 = math.rsqrt %125 : vector<16x1xf32>
    %127 = vector.broadcast %126 : vector<16x1xf32> to vector<16x128xf32>
    %128 = arith.mulf %118, %127 : vector<16x128xf32>
    %129 = arith.truncf %128 : vector<16x128xf32> to vector<16x128xbf16>
    %c0_34 = arith.constant 0 : index
    %c0_35 = arith.constant 0 : index
    %c0_36 = arith.constant 0 : index
    %130 = vector.load %arg9[%c0_34, %c0_35, %c0_36] : memref<1x128x192xbf16, #tpu.memory_space<vmem>>, vector<1x128x192xbf16>
    %131 = vector.shape_cast %130 : vector<1x128x192xbf16> to vector<128x192xbf16>
    %cst_37 = arith.constant dense<0.000000e+00> : vector<16x192xf32>
    %132 = tpu.matmul %129, %131, %cst_37 {dimension_numbers = #tpu.dot_dimension_numbers<[1], [0], [0], [1], [0, 0, 1, 1], [], []>} : vector<16x128xbf16>, vector<128x192xbf16>, vector<16x192xf32> -> vector<16x192xf32>
    %c0_38 = arith.constant 0 : index
    %c0_39 = arith.constant 0 : index
    %c0_40 = arith.constant 0 : index
    %133 = vector.load %arg10[%c0_38, %c0_39, %c0_40] : memref<1x1x192xf32, #tpu.memory_space<vmem>>, vector<1x1x192xf32>
    %134 = vector.shape_cast %133 : vector<1x1x192xf32> to vector<1x192xf32>
    %135 = vector.broadcast %134 : vector<1x192xf32> to vector<16x192xf32>
    %136 = arith.addf %132, %135 : vector<16x192xf32>
    %cst_41 = arith.constant dense<0.000000e+00> : vector<16xf32>
    %137 = vector.multi_reduction <add>, %136, %cst_41 [1] : vector<16x192xf32> to vector<16xf32>
    %138 = vector.shape_cast %137 : vector<16xf32> to vector<16x1xf32>
    %cst_42 = arith.constant 0.00520833349 : f32
    %139 = vector.broadcast %cst_42 : f32 to vector<16x1xf32>
    %140 = arith.mulf %138, %139 : vector<16x1xf32>
    %141 = vector.broadcast %140 : vector<16x1xf32> to vector<16x192xf32>
    %142 = arith.subf %136, %141 : vector<16x192xf32>
    %143 = arith.mulf %142, %142 : vector<16x192xf32>
    %cst_43 = arith.constant dense<0.000000e+00> : vector<16xf32>
    %144 = vector.multi_reduction <add>, %143, %cst_43 [1] : vector<16x192xf32> to vector<16xf32>
    %145 = vector.shape_cast %144 : vector<16xf32> to vector<16x1xf32>
    %cst_44 = arith.constant 0.00520833349 : f32
    %146 = vector.broadcast %cst_44 : f32 to vector<16x1xf32>
    %147 = arith.mulf %145, %146 : vector<16x1xf32>
    %cst_45 = arith.constant 9.99999974E-6 : f32
    %148 = vector.broadcast %cst_45 : f32 to vector<16x1xf32>
    %149 = arith.addf %147, %148 : vector<16x1xf32>
    %150 = math.rsqrt %149 : vector<16x1xf32>
    %151 = vector.broadcast %150 : vector<16x1xf32> to vector<16x192xf32>
    %152 = arith.mulf %142, %151 : vector<16x192xf32>
    %153 = arith.truncf %152 : vector<16x192xf32> to vector<16x192xbf16>
    %c0_46 = arith.constant 0 : index
    %c0_47 = arith.constant 0 : index
    %c0_48 = arith.constant 0 : index
    %154 = vector.load %arg11[%c0_46, %c0_47, %c0_48] : memref<1x192x384xbf16, #tpu.memory_space<vmem>>, vector<1x192x384xbf16>
    %155 = vector.shape_cast %154 : vector<1x192x384xbf16> to vector<192x384xbf16>
    %cst_49 = arith.constant dense<0.000000e+00> : vector<16x384xf32>
    %156 = tpu.matmul %153, %155, %cst_49 {dimension_numbers = #tpu.dot_dimension_numbers<[1], [0], [0], [1], [0, 0, 1, 1], [], []>} : vector<16x192xbf16>, vector<192x384xbf16>, vector<16x384xf32> -> vector<16x384xf32>
    %c0_50 = arith.constant 0 : index
    %c0_51 = arith.constant 0 : index
    %c0_52 = arith.constant 0 : index
    %157 = vector.load %arg12[%c0_50, %c0_51, %c0_52] : memref<1x1x384xf32, #tpu.memory_space<vmem>>, vector<1x1x384xf32>
    %158 = vector.shape_cast %157 : vector<1x1x384xf32> to vector<1x384xf32>
    %159 = vector.broadcast %158 : vector<1x384xf32> to vector<16x384xf32>
    %160 = arith.addf %156, %159 : vector<16x384xf32>
    %cst_53 = arith.constant dense<0.000000e+00> : vector<16xf32>
    %161 = vector.multi_reduction <add>, %160, %cst_53 [1] : vector<16x384xf32> to vector<16xf32>
    %162 = vector.shape_cast %161 : vector<16xf32> to vector<16x1xf32>
    %cst_54 = arith.constant 0.00260416674 : f32
    %163 = vector.broadcast %cst_54 : f32 to vector<16x1xf32>
    %164 = arith.mulf %162, %163 : vector<16x1xf32>
    %165 = vector.broadcast %164 : vector<16x1xf32> to vector<16x384xf32>
    %166 = arith.subf %160, %165 : vector<16x384xf32>
    %167 = arith.mulf %166, %166 : vector<16x384xf32>
    %cst_55 = arith.constant dense<0.000000e+00> : vector<16xf32>
    %168 = vector.multi_reduction <add>, %167, %cst_55 [1] : vector<16x384xf32> to vector<16xf32>
    %169 = vector.shape_cast %168 : vector<16xf32> to vector<16x1xf32>
    %cst_56 = arith.constant 0.00260416674 : f32
    %170 = vector.broadcast %cst_56 : f32 to vector<16x1xf32>
    %171 = arith.mulf %169, %170 : vector<16x1xf32>
    %cst_57 = arith.constant 9.99999974E-6 : f32
    %172 = vector.broadcast %cst_57 : f32 to vector<16x1xf32>
    %173 = arith.addf %171, %172 : vector<16x1xf32>
    %174 = math.rsqrt %173 : vector<16x1xf32>
    %175 = vector.broadcast %174 : vector<16x1xf32> to vector<16x384xf32>
    %176 = arith.mulf %166, %175 : vector<16x384xf32>
    %177 = arith.truncf %176 : vector<16x384xf32> to vector<16x384xbf16>
    %c0_58 = arith.constant 0 : index
    %c0_59 = arith.constant 0 : index
    %c0_60 = arith.constant 0 : index
    %178 = vector.load %arg13[%c0_58, %c0_59, %c0_60] : memref<1x384x768xbf16, #tpu.memory_space<vmem>>, vector<1x384x768xbf16>
    %179 = vector.shape_cast %178 : vector<1x384x768xbf16> to vector<384x768xbf16>
    %cst_61 = arith.constant dense<0.000000e+00> : vector<16x768xf32>
    %180 = tpu.matmul %177, %179, %cst_61 {dimension_numbers = #tpu.dot_dimension_numbers<[1], [0], [0], [1], [0, 0, 1, 1], [], []>} : vector<16x384xbf16>, vector<384x768xbf16>, vector<16x768xf32> -> vector<16x768xf32>
    %c0_62 = arith.constant 0 : index
    %c0_63 = arith.constant 0 : index
    %c0_64 = arith.constant 0 : index
    %181 = vector.load %arg14[%c0_62, %c0_63, %c0_64] : memref<1x1x768xf32, #tpu.memory_space<vmem>>, vector<1x1x768xf32>
    %182 = vector.shape_cast %181 : vector<1x1x768xf32> to vector<1x768xf32>
    %183 = vector.broadcast %182 : vector<1x768xf32> to vector<16x768xf32>
    %184 = arith.addf %180, %183 : vector<16x768xf32>
    %cst_65 = arith.constant dense<0.000000e+00> : vector<16xf32>
    %185 = vector.multi_reduction <add>, %184, %cst_65 [1] : vector<16x768xf32> to vector<16xf32>
    %186 = vector.shape_cast %185 : vector<16xf32> to vector<16x1xf32>
    %cst_66 = arith.constant 0.00130208337 : f32
    %187 = vector.broadcast %cst_66 : f32 to vector<16x1xf32>
    %188 = arith.mulf %186, %187 : vector<16x1xf32>
    %189 = vector.broadcast %188 : vector<16x1xf32> to vector<16x768xf32>
    %190 = arith.subf %184, %189 : vector<16x768xf32>
    %191 = arith.mulf %190, %190 : vector<16x768xf32>
    %cst_67 = arith.constant dense<0.000000e+00> : vector<16xf32>
    %192 = vector.multi_reduction <add>, %191, %cst_67 [1] : vector<16x768xf32> to vector<16xf32>
    %193 = vector.shape_cast %192 : vector<16xf32> to vector<16x1xf32>
    %cst_68 = arith.constant 0.00130208337 : f32
    %194 = vector.broadcast %cst_68 : f32 to vector<16x1xf32>
    %195 = arith.mulf %193, %194 : vector<16x1xf32>
    %cst_69 = arith.constant 9.99999974E-6 : f32
    %196 = vector.broadcast %cst_69 : f32 to vector<16x1xf32>
    %197 = arith.addf %195, %196 : vector<16x1xf32>
    %198 = math.rsqrt %197 : vector<16x1xf32>
    %199 = vector.broadcast %198 : vector<16x1xf32> to vector<16x768xf32>
    %200 = arith.mulf %190, %199 : vector<16x768xf32>
    %201 = arith.truncf %200 : vector<16x768xf32> to vector<16x768xbf16>
    %c0_70 = arith.constant 0 : index
    %c0_71 = arith.constant 0 : index
    %c0_72 = arith.constant 0 : index
    %202 = vector.load %arg15[%c0_70, %c0_71, %c0_72] : memref<1x768x192xbf16, #tpu.memory_space<vmem>>, vector<1x768x192xbf16>
    %203 = vector.shape_cast %202 : vector<1x768x192xbf16> to vector<768x192xbf16>
    %cst_73 = arith.constant dense<0.000000e+00> : vector<16x192xf32>
    %204 = tpu.matmul %201, %203, %cst_73 {dimension_numbers = #tpu.dot_dimension_numbers<[1], [0], [0], [1], [0, 0, 1, 1], [], []>} : vector<16x768xbf16>, vector<768x192xbf16>, vector<16x192xf32> -> vector<16x192xf32>
    %c0_74 = arith.constant 0 : index
    %c0_75 = arith.constant 0 : index
    %c0_76 = arith.constant 0 : index
    %205 = vector.load %arg16[%c0_74, %c0_75, %c0_76] : memref<1x1x192xf32, #tpu.memory_space<vmem>>, vector<1x1x192xf32>
    %206 = vector.shape_cast %205 : vector<1x1x192xf32> to vector<1x192xf32>
    %207 = vector.broadcast %206 : vector<1x192xf32> to vector<16x192xf32>
    %208 = arith.addf %204, %207 : vector<16x192xf32>
    %cst_77 = arith.constant dense<0.000000e+00> : vector<16xf32>
    %209 = vector.multi_reduction <add>, %208, %cst_77 [1] : vector<16x192xf32> to vector<16xf32>
    %210 = vector.shape_cast %209 : vector<16xf32> to vector<16x1xf32>
    %cst_78 = arith.constant 0.00520833349 : f32
    %211 = vector.broadcast %cst_78 : f32 to vector<16x1xf32>
    %212 = arith.mulf %210, %211 : vector<16x1xf32>
    %213 = vector.broadcast %212 : vector<16x1xf32> to vector<16x192xf32>
    %214 = arith.subf %208, %213 : vector<16x192xf32>
    %215 = arith.mulf %214, %214 : vector<16x192xf32>
    %cst_79 = arith.constant dense<0.000000e+00> : vector<16xf32>
    %216 = vector.multi_reduction <add>, %215, %cst_79 [1] : vector<16x192xf32> to vector<16xf32>
    %217 = vector.shape_cast %216 : vector<16xf32> to vector<16x1xf32>
    %cst_80 = arith.constant 0.00520833349 : f32
    %218 = vector.broadcast %cst_80 : f32 to vector<16x1xf32>
    %219 = arith.mulf %217, %218 : vector<16x1xf32>
    %cst_81 = arith.constant 9.99999974E-6 : f32
    %220 = vector.broadcast %cst_81 : f32 to vector<16x1xf32>
    %221 = arith.addf %219, %220 : vector<16x1xf32>
    %222 = math.rsqrt %221 : vector<16x1xf32>
    %223 = vector.broadcast %222 : vector<16x1xf32> to vector<16x192xf32>
    %224 = arith.mulf %214, %223 : vector<16x192xf32>
    %225 = arith.truncf %224 : vector<16x192xf32> to vector<16x192xbf16>
    %c0_82 = arith.constant 0 : index
    %c0_83 = arith.constant 0 : index
    %c0_84 = arith.constant 0 : index
    %226 = vector.load %arg17[%c0_82, %c0_83, %c0_84] : memref<1x192x48xbf16, #tpu.memory_space<vmem>>, vector<1x192x48xbf16>
    %227 = vector.shape_cast %226 : vector<1x192x48xbf16> to vector<192x48xbf16>
    %cst_85 = arith.constant dense<0.000000e+00> : vector<16x48xf32>
    %228 = tpu.matmul %225, %227, %cst_85 {dimension_numbers = #tpu.dot_dimension_numbers<[1], [0], [0], [1], [0, 0, 1, 1], [], []>} : vector<16x192xbf16>, vector<192x48xbf16>, vector<16x48xf32> -> vector<16x48xf32>
    %c0_86 = arith.constant 0 : index
    %c0_87 = arith.constant 0 : index
    %c0_88 = arith.constant 0 : index
    %229 = vector.load %arg18[%c0_86, %c0_87, %c0_88] : memref<1x1x48xf32, #tpu.memory_space<vmem>>, vector<1x1x48xf32>
    %230 = vector.shape_cast %229 : vector<1x1x48xf32> to vector<1x48xf32>
    %231 = vector.broadcast %230 : vector<1x48xf32> to vector<16x48xf32>
    %232 = arith.addf %228, %231 : vector<16x48xf32>
    %cst_89 = arith.constant dense<0.000000e+00> : vector<16xf32>
    %233 = vector.multi_reduction <add>, %232, %cst_89 [1] : vector<16x48xf32> to vector<16xf32>
    %234 = vector.shape_cast %233 : vector<16xf32> to vector<16x1xf32>
    %cst_90 = arith.constant 0.020833334 : f32
    %235 = vector.broadcast %cst_90 : f32 to vector<16x1xf32>
    %236 = arith.mulf %234, %235 : vector<16x1xf32>
    %237 = vector.broadcast %236 : vector<16x1xf32> to vector<16x48xf32>
    %238 = arith.subf %232, %237 : vector<16x48xf32>
    %239 = arith.mulf %238, %238 : vector<16x48xf32>
    %cst_91 = arith.constant dense<0.000000e+00> : vector<16xf32>
    %240 = vector.multi_reduction <add>, %239, %cst_91 [1] : vector<16x48xf32> to vector<16xf32>
    %241 = vector.shape_cast %240 : vector<16xf32> to vector<16x1xf32>
    %cst_92 = arith.constant 0.020833334 : f32
    %242 = vector.broadcast %cst_92 : f32 to vector<16x1xf32>
    %243 = arith.mulf %241, %242 : vector<16x1xf32>
    %cst_93 = arith.constant 9.99999974E-6 : f32
    %244 = vector.broadcast %cst_93 : f32 to vector<16x1xf32>
    %245 = arith.addf %243, %244 : vector<16x1xf32>
    %246 = math.rsqrt %245 : vector<16x1xf32>
    %247 = vector.broadcast %246 : vector<16x1xf32> to vector<16x48xf32>
    %248 = arith.mulf %238, %247 : vector<16x48xf32>
    %249 = arith.truncf %248 : vector<16x48xf32> to vector<16x48xbf16>
    %c0_94 = arith.constant 0 : index
    %c0_95 = arith.constant 0 : index
    %c0_96 = arith.constant 0 : index
    %250 = vector.load %arg19[%c0_94, %c0_95, %c0_96] : memref<1x48x128xbf16, #tpu.memory_space<vmem>>, vector<1x48x128xbf16>
    %251 = vector.shape_cast %250 : vector<1x48x128xbf16> to vector<48x128xbf16>
    %cst_97 = arith.constant dense<0.000000e+00> : vector<16x128xf32>
    %252 = tpu.matmul %249, %251, %cst_97 {dimension_numbers = #tpu.dot_dimension_numbers<[1], [0], [0], [1], [0, 0, 1, 1], [], []>} : vector<16x48xbf16>, vector<48x128xbf16>, vector<16x128xf32> -> vector<16x128xf32>
    %c0_98 = arith.constant 0 : index
    %c0_99 = arith.constant 0 : index
    %c0_100 = arith.constant 0 : index
    %253 = vector.load %arg20[%c0_98, %c0_99, %c0_100] : memref<1x1x128xf32, #tpu.memory_space<vmem>>, vector<1x1x128xf32>
    %254 = vector.shape_cast %253 : vector<1x1x128xf32> to vector<1x128xf32>
    %255 = vector.broadcast %254 : vector<1x128xf32> to vector<16x128xf32>
    %256 = arith.addf %252, %255 : vector<16x128xf32>
    %257 = vector.extract_strided_slice %256 {offsets = [0, 0], sizes = [16, 3], strides = [1, 1]} : vector<16x128xf32> to vector<16x3xf32>
    %258 = math.tanh %257 : vector<16x3xf32>
    %c0_101 = arith.constant 0 : index
    %c0_102 = arith.constant 0 : index
    %c0_103 = arith.constant 0 : index
    %259 = vector.load %arg21[%c0_101, %c0_102, %c0_103] : memref<1x16x3xf32, #tpu.memory_space<vmem>>, vector<1x16x3xf32>
    %260 = vector.shape_cast %259 : vector<1x16x3xf32> to vector<16x3xf32>
    %261 = vector.shape_cast %258 : vector<16x3xf32> to vector<1x16x3xf32>
    tpu.vector_store %arg21[%c0_101, %c0_102, %c0_103], %261 {strides = array<i32>} : memref<1x16x3xf32, #tpu.memory_space<vmem>>, vector<1x16x3xf32>,
    return
  }
  func.func @transform_0(%arg0: i32, %arg1: i32) -> (i32, i32) {
    %c0_i32 = arith.constant 0 : i32
    %c0_i32_0 = arith.constant 0 : i32
    return %arg1, %c0_i32 : i32, i32
  }
  func.func @transform_1(%arg0: i32, %arg1: i32) -> (i32, i32, i32) {
    %c0_i32 = arith.constant 0 : i32
    %c0_i32_0 = arith.constant 0 : i32
    %c0_i32_1 = arith.constant 0 : i32
    return %arg0, %c0_i32, %c0_i32_0 : i32, i32, i32
  }
  func.func @transform_2(%arg0: i32, %arg1: i32) -> (i32, i32, i32) {
    %c0_i32 = arith.constant 0 : i32
    %c0_i32_0 = arith.constant 0 : i32
    %c0_i32_1 = arith.constant 0 : i32
    return %arg0, %c0_i32, %c0_i32_0 : i32, i32, i32
  }
  func.func @transform_3(%arg0: i32, %arg1: i32) -> (i32, i32, i32) {
    %c0_i32 = arith.constant 0 : i32
    %c0_i32_0 = arith.constant 0 : i32
    %c0_i32_1 = arith.constant 0 : i32
    return %arg0, %c0_i32, %c0_i32_0 : i32, i32, i32
  }
  func.func @transform_4(%arg0: i32, %arg1: i32) -> (i32, i32, i32) {
    %c0_i32 = arith.constant 0 : i32
    %c0_i32_0 = arith.constant 0 : i32
    %c0_i32_1 = arith.constant 0 : i32
    return %arg0, %c0_i32, %c0_i32_0 : i32, i32, i32
  }
  func.func @transform_5(%arg0: i32, %arg1: i32) -> (i32, i32, i32) {
    %c0_i32 = arith.constant 0 : i32
    %c0_i32_0 = arith.constant 0 : i32
    %c0_i32_1 = arith.constant 0 : i32
    return %arg0, %c0_i32, %c0_i32_0 : i32, i32, i32
  }
  func.func @transform_6(%arg0: i32, %arg1: i32) -> (i32, i32, i32) {
    %c0_i32 = arith.constant 0 : i32
    %c0_i32_0 = arith.constant 0 : i32
    %c0_i32_1 = arith.constant 0 : i32
    return %arg0, %c0_i32, %c0_i32_0 : i32, i32, i32
  }
  func.func @transform_7(%arg0: i32, %arg1: i32) -> (i32, i32, i32) {
    %c0_i32 = arith.constant 0 : i32
    %c0_i32_0 = arith.constant 0 : i32
    %c0_i32_1 = arith.constant 0 : i32
    return %arg0, %c0_i32, %c0_i32_0 : i32, i32, i32
  }
  func.func @transform_8(%arg0: i32, %arg1: i32) -> (i32, i32, i32) {
    %c0_i32 = arith.constant 0 : i32
    %c0_i32_0 = arith.constant 0 : i32
    %c0_i32_1 = arith.constant 0 : i32
    return %arg0, %c0_i32, %c0_i32_0 : i32, i32, i32
  }
  func.func @transform_9(%arg0: i32, %arg1: i32) -> (i32, i32, i32) {
    %c0_i32 = arith.constant 0 : i32
    %c0_i32_0 = arith.constant 0 : i32
    %c0_i32_1 = arith.constant 0 : i32
    return %arg0, %c0_i32, %c0_i32_0 : i32, i32, i32
  }
  func.func @transform_10(%arg0: i32, %arg1: i32) -> (i32, i32, i32) {
    %c0_i32 = arith.constant 0 : i32
    %c0_i32_0 = arith.constant 0 : i32
    %c0_i32_1 = arith.constant 0 : i32
    return %arg0, %c0_i32, %c0_i32_0 : i32, i32, i32
  }
  func.func @transform_11(%arg0: i32, %arg1: i32) -> (i32, i32, i32) {
    %c0_i32 = arith.constant 0 : i32
    %c0_i32_0 = arith.constant 0 : i32
    %c0_i32_1 = arith.constant 0 : i32
    return %arg0, %c0_i32, %c0_i32_0 : i32, i32, i32
  }
  func.func @transform_12(%arg0: i32, %arg1: i32) -> (i32, i32, i32) {
    %c0_i32 = arith.constant 0 : i32
    %c0_i32_0 = arith.constant 0 : i32
    %c0_i32_1 = arith.constant 0 : i32
    return %arg0, %c0_i32, %c0_i32_0 : i32, i32, i32
  }
  func.func @transform_13(%arg0: i32, %arg1: i32) -> (i32, i32, i32) {
    %c0_i32 = arith.constant 0 : i32
    %c0_i32_0 = arith.constant 0 : i32
    %c0_i32_1 = arith.constant 0 : i32
    return %arg0, %c0_i32, %c0_i32_0 : i32, i32, i32
  }
  func.func @transform_14(%arg0: i32, %arg1: i32) -> (i32, i32, i32) {
    %c0_i32 = arith.constant 0 : i32
    %c0_i32_0 = arith.constant 0 : i32
    %c0_i32_1 = arith.constant 0 : i32
    return %arg0, %c0_i32, %c0_i32_0 : i32, i32, i32
  }
  func.func @transform_15(%arg0: i32, %arg1: i32) -> (i32, i32, i32) {
    %c0_i32 = arith.constant 0 : i32
    %c0_i32_0 = arith.constant 0 : i32
    %c0_i32_1 = arith.constant 0 : i32
    return %arg0, %c0_i32, %c0_i32_0 : i32, i32, i32
  }
  func.func @transform_16(%arg0: i32, %arg1: i32) -> (i32, i32, i32) {
    %c0_i32 = arith.constant 0 : i32
    %c0_i32_0 = arith.constant 0 : i32
    %c0_i32_1 = arith.constant 0 : i32
    return %arg0, %c0_i32, %c0_i32_0 : i32, i32, i32
  }
  func.func @transform_17(%arg0: i32, %arg1: i32) -> (i32, i32, i32) {
    %c0_i32 = arith.constant 0 : i32
    %c0_i32_0 = arith.constant 0 : i32
    %c0_i32_1 = arith.constant 0 : i32
    return %arg0, %c0_i32, %c0_i32_0 : i32, i32, i32
  }
  func.func @transform_18(%arg0: i32, %arg1: i32) -> (i32, i32, i32) {
    %c0_i32 = arith.constant 0 : i32
    %c0_i32_0 = arith.constant 0 : i32
    %c0_i32_1 = arith.constant 0 : i32
    return %arg0, %c0_i32, %c0_i32_0 : i32, i32, i32
  }
  func.func @transform_19(%arg0: i32, %arg1: i32) -> (i32, i32, i32) {
    %c0_i32 = arith.constant 0 : i32
    %c0_i32_0 = arith.constant 0 : i32
    return %arg0, %arg1, %c0_i32 : i32, i32, i32
  }
}

</mosaic_0001>

<bundles_post_ra>
// kernel: tpu_custom_call.1
= control target key start
LH: loop header
LB: loop body
LE: loop exit
PB: predicated region body
PF: predicated region fallthrough
CT: control target
= control target key end

     0   :  { %s5452_s30 = smov 0   ;;  %s5454_s20 = smov 0   ;;  %s6200_s0 = inlined_call_operand.vmem [shape: f32[16,2], index: 0, kind: input, shape index: {}]   ;;  %s6201_s1 = inlined_call_operand.vmem [shape: bf16[2,2,8], index: 1, kind: input, shape index: {}]   ;;  %s6202_s2 = inlined_call_operand.vmem [shape: f32[2,1,8], index: 2, kind: input, shape index: {}]   ;;  %s6203_s3 = inlined_call_operand.vmem [shape: bf16[2,8,32], index: 3, kind: input, shape index: {}]   ;;  %s6204_s4 = inlined_call_operand.vmem [shape: f32[2,1,32], index: 4, kind: input, shape index: {}]   ;;  %s6205_s5 = inlined_call_operand.vmem [shape: bf16[2,32,128], index: 5, kind: input, shape index: {}]   ;;  %s6206_s6 = inlined_call_operand.vmem [shape: f32[2,1,128], index: 6, kind: input, shape index: {}]   ;;  %s6207_s7 = inlined_call_operand.vmem [shape: bf16[2,128,192], index: 7, kind: input, shape index: {}]   ;;  %s6208_s8 = inlined_call_operand.vmem [shape: f32[2,1,192], index: 8, kind: input, shape index: {}]   ;;  %s6209_s9 = inlined_call_operand.vmem [shape: bf16[2,192,384], index: 9, kind: input, shape index: {}]   ;;  %s6210_s10 = inlined_call_operand.vmem [shape: f32[2,1,384], index: 10, kind: input, shape index: {}]   ;;  %s6211_s11 = inlined_call_operand.vmem [shape: bf16[2,384,768], index: 11, kind: input, shape index: {}]   ;;  %s6212_s12 = inlined_call_operand.vmem [shape: f32[2,1,768], index: 12, kind: input, shape index: {}]   ;;  %s6213_s13 = inlined_call_operand.vmem [shape: bf16[2,768,192], index: 13, kind: input, shape index: {}]   ;;  %s6214_s14 = inlined_call_operand.vmem [shape: f32[2,1,192], index: 14, kind: input, shape index: {}]   ;;  %s6215_s15 = inlined_call_operand.vmem [shape: bf16[2,192,48], index: 15, kind: input, shape index: {}]   ;;  %s6216_s16 = inlined_call_operand.vmem [shape: f32[2,1,48], index: 16, kind: input, shape index: {}]   ;;  %s6217_s17 = inlined_call_operand.vmem [shape: bf16[2,48,128], index: 17, kind: input, shape index: {}]   ;;  %s6218_s18 = inlined_call_operand.vmem [shape: f32[2,1,128], index: 18, kind: input, shape index: {}]   ;;  %s6219_s19 = inlined_call_operand.vmem [shape: f32[2,16,3], index: 19, kind: output, shape index: {}]  }
   0x1   :  { %6221 = sst [smem:[#allocation2_spill]] %s6200_s0  ;;  %s5450_s0 = smov 0  }
   0x2   :  { %6222 = sst [smem:[#allocation3_spill]] %s6201_s1 }
   0x3   :  { %6223 = sst [smem:[#allocation4_spill]] %s6202_s2 }
   0x4   :  { %6224 = sst [smem:[#allocation5_spill]] %s6203_s3 }
   0x5 LB: > { %s41_s21 = sadd.s32 1, %s5334_s30  ;;  %p4375_p0 = scmp.ge.s32.totalorder %s5338_s20, 1  ;;  %s5338_s20 = sphi %s5454_s20, %s29_s20   ;;  %s5334_s30 = sphi %s5452_s30, %s6230_s30   ;;  %s5330_s0 = sphi %s5450_s0, %s6229_s0  }
   0x6   : > { %p43_p1 = scmp.ge.s32.totalorder %s41_s21, 2  ;;  %p715_p2 = scmp.lt.s32.totalorder %s5338_s20, 3 }
   0x8   : > { %s6232_s21 = smov (%p43_p1, %s41_s21), 0  ;;  %p716_p3 = pnand %p4375_p0, %p715_p2 }
   0x9   : > { %s6225_s2 = sld [smem:[#allocation2_spill]] (!%p716_p3)  ;;  %v5340_v1 = vmov (!%p716_p3), 1   ;;  %v5341_v2 = vmov (!%p716_p3), 0   ;;  %p854_p4 = scmp.lt.s32.totalorder (!%p716_p3), %s5330_s0, 1  ;;  %v953_v4 = vlaneseq (!%p716_p3)  ;;  %vm983_vm0 = vcmask (!%p716_p3), 64512  }
   0xa   : > { %719 = sbr.rel (%p716_p3) target bundleno = 4626 (0x1212), region = 96  ;;  %4817 = vset.pattern.permute.xlu1 (!%p716_p3), %v5340_v1  ;;  %4816 = vset.pattern.permute.xlu0 (!%p716_p3), %v5341_v2  ;;  %s6226_s26 = sld [smem:[#allocation3_spill]] (!%p716_p3)  ;;  %v5342_v47 = vmov (!%p716_p3), 2   ;;  %v5343_v48 = vmov (!%p716_p3), 3   ;;  %v5344_v49 = vmov (!%p716_p3), 5   ;;  %v5345_v50 = vmov (!%p716_p3), 4  }
   0xb   : > { %1760 = vmatprep.subr.bf16.mxu1 (!%p716_p3), %v5341_v2  ;;  %v5484_v5 = vshrl.u32 (!%p716_p3), %v953_v4, 7  ;;  %s6227_s1 = sld [smem:[#allocation4_spill]] (!%p716_p3)  ;;  %v5346_v51 = vmov (!%p716_p3), 6   ;;  %v5347_v52 = vmov (!%p716_p3), 7   ;;  %s6228_s3 = sld [smem:[#allocation5_spill]] (!%p716_p3)  ;;  %vm1149_vm1 = vcmask (!%p716_p3), 261120  }
   0xc   : > { %vm5349_vm2 = vmmov (!%p716_p3), 0   ;;  %vm1418_vm3 = vcmask (!%p716_p3), 523264   ;;  %vm3980_vm4 = vcmask (!%p716_p3), 392192   ;;  %vm4085_vm5 = vcmask (!%p716_p3), 23552  }
   0xd   : > { %v5487_v7 = vsub.s32 (!%p716_p3), 1, %v5484_v5  ;;  %v5490_v9 = vsub.s32 (!%p716_p3), 0, %v5484_v5  ;;  %v5509_v62 = vsub.s32 (!%p716_p3), 2, %v5484_v5 }
   0xf   : > { %v938_v0 = vld [vmem:[%s6225_s2] sm:$0xff] (!%p716_p3)  ;;  %v939_v3 = vld [vmem:[%s6225_s2 + $0x8] sm:$0xff] (!%p716_p3) }
  0x10   : > { %968 = vperm.xlu1 (!%p716_p3), %4817, %v938_v0   ;;  %945 = vperm.xlu0 (!%p716_p3), %4816, %v938_v0  }
  0x11   : > { %s6234_s0 = smov (!%p854_p4, %s5330_s0), 1 }
  0x12   : > { %s856_s27 = scalar_lea.vmem %s6226_s26, %s6234_s0  ;;  %s859_s22 = scalar_lea.vmem %s6227_s1, %s6234_s0 }
  0x13   : > { %v940_v6 = vld [vmem:[%s856_s27] sm:$0x1]  ;;  %s4376_s23 = sshll.u32 %s6234_s0, 2  ;;  %s866_s29 = scalar_lea.vmem %s6204_s4, %s6234_s0 }
  0x14   : > { %972 = vperm.xlu1 %4817, %v939_v3   ;;  %950 = vperm.xlu0 %4816, %v939_v3   ;;  %v941_v8 = vunpack.c.l.bf16 %v940_v6  ;;  %v4390_v14 = vld [vmem:[%s859_s22] ss:$0 sm:$0xff]  ;;  %s863_s26 = scalar_lea.vmem %s6228_s3, %s4376_s23  ;;  %v1079_v3 = vsub.s32 3, %v5484_v5  ;;  %s4711_s1 = sshll.u32 %s6234_s0, 4 }
  0x15   : > { %v1010_v57 = vld [vmem:[%s863_s26] sm:$0xf]  ;;  %s871_s24 = scalar_lea.vmem %s6205_s5, %s4711_s1  ;;  %s874_s26 = scalar_lea.vmem %s6206_s6, %s6234_s0 }
  0x16   : > { %v978_v10 = vrot.slane %v941_v8, %v5487_v7  ;;  %v956_v11 = vrot.slane %v941_v8, %v5490_v9  ;;  %v1011_v58 = vunpack.c.l.bf16 %v1010_v57  ;;  %v1095_v8 = vsub.s32 4, %v5484_v5  ;;  %s4712_s27 = sshll.u32 %s6234_s0, 7  ;;  %s4381_s23 = sshll.u32 %s6234_s0, 1 }
  0x17   : > { %s5552_s22 = scalar_lea.vmem %s6207_s7, %s4712_s27  ;;  %s883_s3 = scalar_lea.vmem %s6208_s8, %s4381_s23 }
  0x18   : > { %4818 = vset.pattern.permute.xlu1 %v5341_v2  ;;  %v1026_v61 = vrot.slane %v1011_v58, %v5490_v9  ;;  %v1048_v63 = vrot.slane %v1011_v58, %v5487_v7  ;;  %v1064_v6 = vrot.slane %v1011_v58, %v5509_v62  ;;  %s910_s25 = scalar_lea.vmem %s6214_s14, %s4381_s23  ;;  %s4780_s23 = smul.u32 96, %s6234_s0 }
  0x19   : > { %s926_s28 = scalar_lea.vmem %s6218_s18, %s6234_s0 }
  0x1a   : > { %s6136_s27 = scalar_lea.vmem %s6215_s15, %s4780_s23 }
  0x8f   : > { %v969_v12 = vpop.permute.xlu1 %968  ;;  %v946_v13 = vpop.permute.xlu0 %945 }
  0x90   : > { %v979_v15 = vmul.f32 %v978_v10, %v969_v12  ;;  %v957_v16 = vmul.f32 %v956_v11, %v946_v13 }
  0x92   : > { %v965_v17 = vadd.f32 %v4390_v14, %v957_v16 }
  0x93   : > { %v973_v18 = vpop.permute.xlu1 %972  ;;  %v951_v19 = vpop.permute.xlu0 %950 }
  0x94   : > { %v958_v20 = vmul.f32 %v956_v11, %v951_v19  ;;  %v981_v21 = vadd.f32 %v979_v15, %v965_v17  ;;  %v980_v22 = vmul.f32 %v978_v10, %v973_v18  ;;  %v4391_v10 = vld [vmem:[%s866_s29] ss:$0 sm:$0xff]  ;;  %v1096_v18 = vrot.slane %v1011_v58, %v1095_v8 }
  0x96   : > { %v966_v23 = vadd.f32 %v4390_v14, %v958_v20  ;;  %v984_v24 = vsel %vm983_vm0, %v981_v21, 0.0  ;;  %v1080_v14 = vrot.slane %v1011_v58, %v1079_v3  ;;  %v1111_v20 = vsub.s32 5, %v5484_v5 }
  0x97   : > { %985 = vadd.xlane.f32.xlu0 %v984_v24 }
  0x98   : > { %v982_v25 = vadd.f32 %v980_v22, %v966_v23 }
  0x9a   : > { %v987_v26 = vsel %vm983_vm0, %v982_v25, 0.0 }
  0x9b   : > { %988 = vadd.xlane.f32.xlu1 %v987_v26 }
 0x124   : > { %v986_v27 = vpop.xlane.xlu0 %985 }
 0x125   : > { %v990_v28 = vmul.f32 0.125, %v986_v27 }
 0x127   : > { %v992_v29 = vsub.f32 %v981_v21, %v990_v28 }
 0x128   : > { %v989_v30 = vpop.xlane.xlu1 %988 }
 0x129   : > { %v991_v31 = vmul.f32 0.125, %v989_v30  ;;  %v994_v32 = vmul.f32 %v992_v29, %v992_v29  ;;  %v1143_v30 = vsub.s32 7, %v5484_v5 }
 0x12b   : > { %v993_v33 = vsub.f32 %v982_v25, %v991_v31  ;;  %v996_v34 = vsel %vm983_vm0, %v994_v32, 0.0 }
 0x12c   : > { %997 = vadd.xlane.f32.xlu0 %v996_v34 }
 0x12d   : > { %v995_v35 = vmul.f32 %v993_v33, %v993_v33 }
 0x12f   : > { %v999_v36 = vsel %vm983_vm0, %v995_v35, 0.0 }
 0x130   : > { %1000 = vadd.xlane.f32.xlu0 %v999_v36 }
 0x1b9   : > { %v998_v37 = vpop.xlane.xlu0 %997 }
 0x1ba   : > { %v1002_v38 = vmul.f32 0.125, %v998_v37 }
 0x1bc   : > { %v1004_v39 = vadd.f32 1e-05, %v1002_v38 }
 0x1bd   : > { %v1001_v40 = vpop.xlane.xlu0 %1000 }
 0x1be   : > { %5280 = vrsqrt.f32 %v1004_v39  ;;  %v1003_v41 = vmul.f32 0.125, %v1001_v40  ;;  %v1144_v40 = vrot.slane %v1011_v58, %v1143_v30 }
 0x1c0   : > { %v1005_v42 = vadd.f32 1e-05, %v1003_v41 }
 0x1c2   : > { %5282 = vrsqrt.f32 %v1005_v42 }
 0x1c8   : > { %v5281_v43 = vpop.eup %5280 }
 0x1c9   : > { %v1008_v44 = vmul.f32 %v5281_v43, %v992_v29  ;;  %v1127_v29 = vsub.s32 6, %v5484_v5 }
 0x1cb   : > { %1015 = vperm.xlu1 %4818, %v1008_v44   ;;  %v1128_v37 = vrot.slane %v1011_v58, %v1127_v29 }
 0x1cc   : > { %v5283_v45 = vpop.eup %5282 }
 0x1cd   : > { %v1009_v46 = vmul.f32 %v5283_v45, %v993_v33  ;;  %v1112_v33 = vrot.slane %v1011_v58, %v1111_v20 }
 0x1cf   : > { %4819 = vset.pattern.permute.xlu1 %v5340_v1  ;;  %1020 = vperm.xlu0 %4816, %v1009_v46  }
 0x1d0   : > { %1038 = vperm.xlu1 %4819, %v1008_v44  }
 0x1d3   : > { %4820 = vset.pattern.permute.xlu0 %v5342_v47 }
 0x1d4   : > { %1042 = vperm.xlu1 %4819, %v1009_v46   ;;  %1054 = vperm.xlu0 %4820, %v1008_v44  }
 0x1d8   : > { %4821 = vset.pattern.permute.xlu1 %v5342_v47  ;;  %4823 = vset.pattern.permute.xlu0 %v5343_v48 }
 0x1d9   : > { %1058 = vperm.xlu1 %4821, %v1009_v46   ;;  %1074 = vperm.xlu0 %4823, %v1009_v46  }
 0x1dd   : > { %4822 = vset.pattern.permute.xlu1 %v5343_v48  ;;  %4825 = vset.pattern.permute.xlu0 %v5344_v49 }
 0x1de   : > { %1070 = vperm.xlu1 %4822, %v1008_v44   ;;  %1102 = vperm.xlu0 %4825, %v1008_v44  }
 0x1e2   : > { %4824 = vset.pattern.permute.xlu1 %v5345_v50  ;;  %4828 = vset.pattern.permute.xlu0 %v5346_v51 }
 0x1e3   : > { %1086 = vperm.xlu1 %4824, %v1008_v44   ;;  %1122 = vperm.xlu0 %4828, %v1009_v46  }
 0x1e7   : > { %1090 = vperm.xlu1 %4824, %v1009_v46   ;;  %4830 = vset.pattern.permute.xlu0 %v5347_v52 }
 0x1eb   : > { %4826 = vset.pattern.permute.xlu1 %v5344_v49 }
 0x1ec   : > { %1106 = vperm.xlu1 %4826, %v1009_v46  }
 0x1f0   : > { %4827 = vset.pattern.permute.xlu1 %v5346_v51 }
 0x1f1   : > { %1118 = vperm.xlu1 %4827, %v1008_v44  }
 0x1f5   : > { %4829 = vset.pattern.permute.xlu1 %v5347_v52 }
 0x1f6   : > { %1134 = vperm.xlu1 %4829, %v1008_v44  }
 0x1fa   : > { %1138 = vperm.xlu1 %4829, %v1009_v46  }
 0x24a   : > { %v1016_v53 = vpop.permute.xlu1 %1015 }
 0x24b   : > { %v1027_v4 = vmul.f32 %v1026_v61, %v1016_v53 }
 0x24d   : > { %v1035_v15 = vadd.f32 %v4391_v10, %v1027_v4 }
 0x24e   : > { %v1021_v59 = vpop.permute.xlu0 %1020 }
 0x24f   : > { %v1039_v54 = vpop.permute.xlu1 %1038  ;;  %v1028_v11 = vmul.f32 %v1026_v61, %v1021_v59 }
 0x250   : > { %v1049_v12 = vmul.f32 %v1048_v63, %v1039_v54 }
 0x251   : > { %v1036_v21 = vadd.f32 %v4391_v10, %v1028_v11 }
 0x252   : > { %v1051_v22 = vadd.f32 %v1049_v12, %v1035_v15  ;;  %v4832_v15 = vld [vmem:[%s871_s24 + $0x8] sm:$0xff]  }
 0x253   : > { %v1043_v55 = vpop.permute.xlu1 %1042  ;;  %v1055_v1 = vpop.permute.xlu0 %1054 }
 0x254   : > { %v1050_v16 = vmul.f32 %v1048_v63, %v1043_v55  ;;  %v1065_v17 = vmul.f32 %v1064_v6, %v1055_v1 }
 0x256   : > { %v1052_v26 = vadd.f32 %v1050_v16, %v1036_v21  ;;  %v1067_v27 = vadd.f32 %v1065_v17, %v1051_v22 }
 0x258   : > { %v1059_v56 = vpop.permute.xlu1 %1058  ;;  %v1075_v19 = vpop.permute.xlu0 %1074 }
 0x259   : > { %v1066_v23 = vmul.f32 %v1064_v6, %v1059_v56  ;;  %v1082_v35 = vmul.f32 %v1080_v14, %v1075_v19 }
 0x25b   : > { %v1068_v31 = vadd.f32 %v1066_v23, %v1052_v26 }
 0x25d   : > { %v1071_v60 = vpop.permute.xlu1 %1070  ;;  %v1103_v34 = vpop.permute.xlu0 %1102  ;;  %v1084_v41 = vadd.f32 %v1082_v35, %v1068_v31  ;;  %v4833_v35 = vld [vmem:[%s5552_s22] ss:$8 sps:$4 sm:$0xff]  }
 0x25e   : > { %v1081_v24 = vmul.f32 %v1080_v14, %v1071_v60  ;;  %v1113_v42 = vmul.f32 %v1112_v33, %v1103_v34  ;;  %v4831_v14 = vld [vmem:[%s871_s24] sm:$0xff]   ;;  %s4781_s24 = smul.u32 24, %s6234_s0 }
 0x260   : > { %v1083_v32 = vadd.f32 %v1081_v24, %v1067_v27 }
 0x262   : > { %v1087_v0 = vpop.permute.xlu1 %1086  ;;  %v1123_v47 = vpop.permute.xlu0 %1122 }
 0x263   : > { %v1097_v28 = vmul.f32 %v1096_v18, %v1087_v0  ;;  %v1130_v52 = vmul.f32 %v1128_v37, %v1123_v47 }
 0x265   : > { %v1099_v36 = vadd.f32 %v1097_v28, %v1083_v32  ;;  %v4392_v28 = vld [vmem:[%s874_s26] ss:$0 sm:$0xff]  ;;  %s4775_s26 = smul.u32 288, %s6234_s0 }
 0x266   : > { %v1091_v13 = vpop.permute.xlu1 %1090 }
 0x267   : > { %v1098_v38 = vmul.f32 %v1096_v18, %v1091_v13  ;;  %v1115_v46 = vadd.f32 %v1113_v42, %v1099_v36  ;;  %v5348_v13 = vmov 0.0   ;;  %v4835_v36 = vld [vmem:[%s5552_s22 + $0x4] ss:$8 sps:$4 sm:$0xff]   ;;  %s5596_s29 = scalar_lea.vmem %s6209_s9, %s4775_s26  ;;  %s4777_s26 = smul.u32 1152, %s6234_s0 }
 0x268   : > { %4721 = vmatprep.subr.bf16.mxu0 %v5348_v13  ;;  %4725 = vmatprep.mubr.msk.bf16.mxu0 %vm5349_vm2, %v5348_v13 }
 0x269   : > { %v1100_v45 = vadd.f32 %v1098_v38, %v1084_v41  ;;  %4722 = vmatpush3.bf16.msra.mxu0 %v4831_v14  ;;  %v4836_v38 = vld [vmem:[%s5552_s22 + $0x10] ss:$8 sps:$4 sm:$0xff]   ;;  %v1283_v14 = vld [vmem:[%s883_s3] sm:$0x3] }
 0x26a   : > { %4723 = vmatprep.subr.bf16.mxu0 %v5348_v13 }
 0x26b   : > { %v1107_v25 = vpop.permute.xlu1 %1106 }
 0x26c   : > { %v1114_v43 = vmul.f32 %v1112_v33, %v1107_v25 }
 0x26d   : > { %4724 = vmatpush3.bf16.msra.mxu0 %v4832_v15  ;;  %v1292_v15 = vrot.slane %v1283_v14, %v5487_v7 }
 0x26e   : > { %v1116_v49 = vadd.f32 %v1114_v43, %v1100_v45  ;;  %1375 = vmatprep.subr.bf16.mxu0 %v4835_v36  ;;  %v4867_v36 = vld [vmem:[%s5596_s29 + $0x34] ss:$12 sps:$4 sm:$0xff]  }
 0x270   : > { %v1119_v39 = vpop.permute.xlu1 %1118  ;;  %v1132_v57 = vadd.f32 %v1130_v52, %v1116_v49  ;;  %v4844_v49 = vld [vmem:[%s5552_s22 + $0x34] ss:$8 sps:$4 sm:$0xff]   ;;  %v4845_v52 = vld [vmem:[%s5552_s22 + $0x40] ss:$8 sps:$4 sm:$0xff]  }
 0x271   : > { %v1129_v44 = vmul.f32 %v1128_v37, %v1119_v39  ;;  %v4838_v37 = vld [vmem:[%s5552_s22 + $0x14] ss:$8 sps:$4 sm:$0xff]   ;;  %v4841_v39 = vld [vmem:[%s5552_s22 + $0x24] ss:$8 sps:$4 sm:$0xff]  }
 0x273   : > { %v1131_v50 = vadd.f32 %v1129_v44, %v1115_v46 }
 0x275   : > { %v1135_v48 = vpop.permute.xlu1 %1134 }
 0x276   : > { %v1145_v51 = vmul.f32 %v1144_v40, %v1135_v48 }
 0x278   : > { %v1147_v53 = vadd.f32 %v1145_v51, %v1131_v50  ;;  %v4842_v50 = vld [vmem:[%s5552_s22 + $0x30] ss:$8 sps:$4 sm:$0xff]   ;;  %v4847_v51 = vld [vmem:[%s5552_s22 + $0x44] ss:$8 sps:$4 sm:$0xff]  }
 0x279   : > { %v1139_v54 = vpop.permute.xlu1 %1138 }
 0x27a   : > { %v1146_v55 = vmul.f32 %v1144_v40, %v1139_v54  ;;  %v1150_v56 = vsel %vm1149_vm1, %v1147_v53, 0.0  ;;  %v4839_v40 = vld [vmem:[%s5552_s22 + $0x20] ss:$8 sps:$4 sm:$0xff]   ;;  %v4850_v54 = vld [vmem:[%s5552_s22 + $0x54] ss:$8 sps:$4 sm:$0xff]  }
 0x27b   : > { %1151 = vadd.xlane.f32.xlu0 %v1150_v56  ;;  %v4851_v56 = vld [vmem:[%s5552_s22 + $0x60] ss:$8 sps:$4 sm:$0xff]  }
 0x27c   : > { %v1148_v58 = vadd.f32 %v1146_v55, %v1132_v57  ;;  %v4853_v55 = vld [vmem:[%s5552_s22 + $0x64] ss:$8 sps:$4 sm:$0xff]   ;;  %v4856_v57 = vld [vmem:[%s5552_s22 + $0x74] ss:$8 sps:$4 sm:$0xff]  }
 0x27e   : > { %v1153_v59 = vsel %vm1149_vm1, %v1148_v58, 0.0 }
 0x27f   : > { %1154 = vadd.xlane.f32.xlu1 %v1153_v59 }
 0x308   : > { %v1152_v60 = vpop.xlane.xlu0 %1151 }
 0x309   : > { %v1156_v61 = vmul.f32 0.03125, %v1152_v60 }
 0x30b   : > { %v1158_v63 = vsub.f32 %v1147_v53, %v1156_v61  ;;  %v4848_v53 = vld [vmem:[%s5552_s22 + $0x50] ss:$8 sps:$4 sm:$0xff]  }
 0x30c   : > { %v1155_v0 = vpop.xlane.xlu1 %1154 }
 0x30d   : > { %v1157_v1 = vmul.f32 0.03125, %v1155_v0  ;;  %v1160_v4 = vmul.f32 %v1158_v63, %v1158_v63 }
 0x30f   : > { %v1159_v6 = vsub.f32 %v1148_v58, %v1157_v1  ;;  %v1162_v10 = vsel %vm1149_vm1, %v1160_v4, 0.0  ;;  %v4854_v58 = vld [vmem:[%s5552_s22 + $0x70] ss:$8 sps:$4 sm:$0xff]   ;;  %s4776_s22 = smul.u32 3, %s6234_s0 }
 0x310   : > { %1163 = vadd.xlane.f32.xlu0 %v1162_v10 }
 0x311   : > { %v1161_v11 = vmul.f32 %v1159_v6, %v1159_v6  ;;  %s892_s3 = scalar_lea.vmem %s6210_s10, %s4776_s22  ;;  %s4778_s22 = smul.u32 6, %s6234_s0 }
 0x313   : > { %v1165_v12 = vsel %vm1149_vm1, %v1161_v11, 0.0 }
 0x314   : > { %1166 = vadd.xlane.f32.xlu0 %v1165_v12 }
 0x39d   : > { %v1164_v16 = vpop.xlane.xlu0 %1163 }
 0x39e   : > { %v1168_v17 = vmul.f32 0.03125, %v1164_v16  ;;  %v1288_v16 = vrot.slane %v1283_v14, %v5490_v9  ;;  %v4891_v14 = vld [vmem:[%s5596_s29 + $0xc4] ss:$12 sps:$4 sm:$0xff]  }
 0x3a0   : > { %v1170_v18 = vadd.f32 1e-05, %v1168_v17 }
 0x3a1   : > { %v1167_v19 = vpop.xlane.xlu0 %1166 }
 0x3a2   : > { %v1169_v21 = vmul.f32 0.03125, %v1167_v19  ;;  %5284 = vrsqrt.f32 %v1170_v18 }
 0x3a4   : > { %v1171_v22 = vadd.f32 1e-05, %v1169_v21 }
 0x3a6   : > { %5286 = vrsqrt.f32 %v1171_v22 }
 0x3ac   : > { %v5285_v23 = vpop.eup %5284 }
 0x3ad   : > { %v1174_v25 = vmul.f32 %v5285_v23, %v1158_v63 }
 0x3b0   : > { %v5287_v24 = vpop.eup %5286 }
 0x3b1   : > { %v1175_v26 = vmul.f32 %v5287_v24, %v1159_v6 }
 0x3b3   : > { %v1176_v27 = vpack.c.bf16 %v1175_v26, %v1174_v25 }
 0x3b5   : > { %4726 = vmatmul.mubr.msk.bf16.vlgmr.msra.gmra.mrb[0].mxu0 %vm1149_vm1, %v1176_v27 }
 0x3b6   : > { %1407 = vmatprep.mubr.bf16.mxu0 %v5341_v2  ;;  %1376 = vmatpush1.bf16.msra.mxu0 %v4833_v35  ;;  %v4864_v35 = vld [vmem:[%s5596_s29 + $0x20] ss:$12 sps:$4 sm:$0xff]  }
 0x3b7   : > { %1377 = vmatprep.subr.bf16.mxu0 %v4838_v37  ;;  %v4865_v37 = vld [vmem:[%s5596_s29 + $0x30] ss:$12 sps:$4 sm:$0xff]  }
 0x3ba   : > { %1378 = vmatpush1.bf16.msra.mxu0 %v4836_v38  ;;  %v4868_v38 = vld [vmem:[%s5596_s29 + $0x38] ss:$12 sps:$4 sm:$0xff]  }
 0x3bb   : > { %1379 = vmatprep.subr.bf16.mxu0 %v4841_v39  ;;  %v4871_v39 = vld [vmem:[%s5596_s29 + $0x4c] ss:$12 sps:$4 sm:$0xff]  }
 0x3be   : > { %1380 = vmatpush1.bf16.msra.mxu0 %v4839_v40  ;;  %v4869_v40 = vld [vmem:[%s5596_s29 + $0x48] ss:$12 sps:$4 sm:$0xff]  }
 0x3bf   : > { %1381 = vmatprep.subr.bf16.mxu0 %v4844_v49  ;;  %v4881_v49 = vld [vmem:[%s5596_s29 + $0x90] ss:$12 sps:$4 sm:$0xff]  }
 0x3c2   : > { %1382 = vmatpush1.bf16.msra.mxu0 %v4842_v50  ;;  %v4884_v50 = vld [vmem:[%s5596_s29 + $0x98] ss:$12 sps:$4 sm:$0xff]  }
 0x3c3   : > { %1383 = vmatprep.subr.bf16.mxu0 %v4847_v51 }
 0x3c6   : > { %1384 = vmatpush1.bf16.msra.mxu0 %v4845_v52 }
 0x3c7   : > { %1385 = vmatprep.subr.bf16.mxu0 %v4850_v54 }
 0x3ca   : > { %1386 = vmatpush1.bf16.msra.mxu0 %v4848_v53 }
 0x3cb   : > { %1387 = vmatprep.subr.bf16.mxu0 %v4853_v55 }
 0x3ce   : > { %1388 = vmatpush1.bf16.msra.mxu0 %v4851_v56 }
 0x3cf   : > { %1389 = vmatprep.subr.bf16.mxu0 %v4856_v57 }
 0x3d2   : > { %1390 = vmatpush1.bf16.msra.mxu0 %v4854_v58 }
 0x488   : > { %v1237_v29 = vpop.f32.mrb[0].mxu0 }
 0x489   : > { %v1238_v30 = vadd.f32 %v4392_v28, %v1237_v29  ;;  %v4727_v31 = vpop.f32.mrb[1].mxu0 }
 0x48a   : > { %v1240_v32 = vpop.f32.mrb[2].mxu0  ;;  %v4859_v31 = vld [vmem:[%s5596_s29 + $0x4] ss:$12 sps:$4 sm:$0xff]  }
 0x48b   : > { %v1241_v33 = vadd.f32 %v4392_v28, %v1240_v32  ;;  %1244 = vadd.xlane.f32.xlu1 %v1238_v30  ;;  %v4728_v34 = vpop.f32.mrb[3].mxu0  ;;  %v4860_v32 = vld [vmem:[%s5596_s29 + $0x8] ss:$12 sps:$4 sm:$0xff]   ;;  %1717 = vmatprep.subr.bf16.mxu0 %v4859_v31 }
 0x48c   : > { %v4863_v34 = vld [vmem:[%s5596_s29 + $0x1c] ss:$12 sps:$4 sm:$0xff]   ;;  %1761 = vmatpush1.bf16.msra.mxu1 %v4860_v32 }
 0x48d   : > { %1246 = vadd.xlane.f32.xlu0 %v1241_v33  ;;  %1762 = vmatprep.subr.bf16.mxu1 %v5341_v2 }
 0x490   : > { %1763 = vmatpush1.bf16.msra.mxu1 %v4864_v35 }
 0x491   : > { %1764 = vmatprep.subr.bf16.mxu1 %v5341_v2 }
 0x494   : > { %1765 = vmatpush1.bf16.msra.mxu1 %v4868_v38 }
 0x495   : > { %1766 = vmatprep.subr.bf16.mxu1 %v5341_v2 }
 0x518   : > { %v1245_v41 = vpop.xlane.xlu1 %1244 }
 0x519   : > { %v1248_v42 = vmul.f32 0.0078125, %v1245_v41  ;;  %v4872_v41 = vld [vmem:[%s5596_s29 + $0x50] ss:$12 sps:$4 sm:$0xff]  }
 0x51a   : > { %v1247_v43 = vpop.xlane.xlu0 %1246  ;;  %1767 = vmatpush1.bf16.msra.mxu1 %v4872_v41  ;;  %v1505_v41 = vld [vmem:[%s892_s3] sm:$0x7]  ;;  %s901_s3 = scalar_lea.vmem %s6212_s12, %s4778_s22  ;;  %s918_s22 = scalar_lea.vmem %s6216_s16, %s6234_s0 }
 0x51b   : > { %v1250_v44 = vsub.f32 %v1238_v30, %v1248_v42  ;;  %v1249_v45 = vmul.f32 0.0078125, %v1247_v43  ;;  %v4857_v30 = vld [vmem:[%s5596_s29] ss:$12 sps:$4 sm:$0xff]   ;;  %v4875_v42 = vld [vmem:[%s5596_s29 + $0x64] ss:$12 sps:$4 sm:$0xff]   ;;  %1768 = vmatprep.subr.bf16.mxu1 %v5341_v2 }
 0x51c   : > { %v4873_v43 = vld [vmem:[%s5596_s29 + $0x60] ss:$12 sps:$4 sm:$0xff]  }
 0x51d   : > { %v1251_v46 = vsub.f32 %v1241_v33, %v1249_v45  ;;  %v1252_v47 = vmul.f32 %v1250_v44, %v1250_v44  ;;  %v4861_v33 = vld [vmem:[%s5596_s29 + $0x18] ss:$12 sps:$4 sm:$0xff]   ;;  %v4879_v45 = vld [vmem:[%s5596_s29 + $0x7c] ss:$12 sps:$4 sm:$0xff]  }
 0x51f   : > { %1254 = vadd.xlane.f32.xlu1 %v1252_v47  ;;  %v1253_v48 = vmul.f32 %v1251_v46, %v1251_v46  ;;  %v4880_v47 = vld [vmem:[%s5596_s29 + $0x80] ss:$12 sps:$4 sm:$0xff]  }
 0x521   : > { %1256 = vadd.xlane.f32.xlu0 %v1253_v48  ;;  %v4883_v48 = vld [vmem:[%s5596_s29 + $0x94] ss:$12 sps:$4 sm:$0xff]  }
 0x5ac   : > { %v1255_v59 = vpop.xlane.xlu1 %1254 }
 0x5ad   : > { %v1258_v60 = vmul.f32 0.0078125, %v1255_v59 }
 0x5ae   : > { %v1257_v61 = vpop.xlane.xlu0 %1256 }
 0x5af   : > { %v1260_v63 = vadd.f32 1e-05, %v1258_v60  ;;  %v1259_v0 = vmul.f32 0.0078125, %v1257_v61 }
 0x5b1   : > { %5288 = vrsqrt.f32 %v1260_v63  ;;  %v1261_v1 = vadd.f32 1e-05, %v1259_v0 }
 0x5b3   : > { %5290 = vrsqrt.f32 %v1261_v1 }
 0x5bb   : > { %v5289_v4 = vpop.eup %5288 }
 0x5bc   : > { %v1264_v10 = vmul.f32 %v5289_v4, %v1250_v44  ;;  %v4876_v44 = vld [vmem:[%s5596_s29 + $0x68] ss:$12 sps:$4 sm:$0xff]  }
 0x5bd   : > { %v5291_v6 = vpop.eup %5290  ;;  %1769 = vmatpush1.bf16.msra.mxu1 %v4876_v44 }
 0x5be   : > { %v1265_v11 = vmul.f32 %v5291_v6, %v1251_v46  ;;  %v4877_v46 = vld [vmem:[%s5596_s29 + $0x78] ss:$12 sps:$4 sm:$0xff]   ;;  %1770 = vmatprep.subr.bf16.mxu1 %v5341_v2 }
 0x5c0   : > { %v1266_v12 = vpack.c.bf16 %v1265_v11, %v1264_v10  ;;  %v4887_v10 = vld [vmem:[%s5596_s29 + $0xac] ss:$12 sps:$4 sm:$0xff]   ;;  %v4885_v11 = vld [vmem:[%s5596_s29 + $0xa8] ss:$12 sps:$4 sm:$0xff]  }
 0x5c1   : > { %1771 = vmatpush1.bf16.msra.mxu1 %v4880_v47 }
 0x5c2   : > { %1408 = vmatmul.mubr.bf16.vlgmr.msra.gmra.mrb[4].mxu0 %v1266_v12  ;;  %1772 = vmatprep.subr.bf16.mxu1 %v5341_v2  ;;  %v4888_v12 = vld [vmem:[%s5596_s29 + $0xb0] ss:$12 sps:$4 sm:$0xff]  }
 0x5c3   : > { %1718 = vmatpush1.bf16.msra.mxu0 %v4857_v30 }
 0x5c4   : > { %1719 = vmatprep.subr.bf16.mxu0 %v4863_v34 }
 0x5c5   : > { %1773 = vmatpush1.bf16.msra.mxu1 %v4884_v50 }
 0x5c6   : > { %1774 = vmatprep.subr.bf16.mxu1 %v5341_v2 }
 0x5c7   : > { %1720 = vmatpush1.bf16.msra.mxu0 %v4861_v33 }
 0x5c8   : > { %1721 = vmatprep.subr.bf16.mxu0 %v4867_v36 }
 0x5c9   : > { %1775 = vmatpush1.bf16.msra.mxu1 %v4888_v12 }
 0x5ca   : > { %1776 = vmatprep.subr.bf16.mxu1 %v5341_v2 }
 0x5cb   : > { %1722 = vmatpush1.bf16.msra.mxu0 %v4865_v37 }
 0x5cc   : > { %1723 = vmatprep.subr.bf16.mxu0 %v4871_v39 }
 0x5cf   : > { %1724 = vmatpush1.bf16.msra.mxu0 %v4869_v40 }
 0x5d0   : > { %1725 = vmatprep.subr.bf16.mxu0 %v4875_v42  ;;  %v1510_v42 = vrot.slane %v1505_v41, %v5490_v9 }
 0x5d3   : > { %1726 = vmatpush1.bf16.msra.mxu0 %v4873_v43  ;;  %v1514_v43 = vrot.slane %v1505_v41, %v5487_v7 }
 0x5d4   : > { %1727 = vmatprep.subr.bf16.mxu0 %v4879_v45  ;;  %v1518_v45 = vrot.slane %v1505_v41, %v5509_v62 }
 0x5d7   : > { %1728 = vmatpush1.bf16.msra.mxu0 %v4877_v46 }
 0x5d8   : > { %1729 = vmatprep.subr.bf16.mxu0 %v4883_v48 }
 0x5db   : > { %1730 = vmatpush1.bf16.msra.mxu0 %v4881_v49 }
 0x5dc   : > { %1731 = vmatprep.subr.bf16.mxu0 %v4887_v10 }
 0x5df   : > { %1732 = vmatpush1.bf16.msra.mxu0 %v4885_v11 }
 0x5e0   : > { %1733 = vmatprep.subr.bf16.mxu0 %v4891_v14 }
 0x695   : > { %v1409_v17 = vpop.f32.mrb[4].mxu0 }
 0x696   : > { %v1411_v18 = vpop.f32.mrb[5].mxu0  ;;  %v5580_v22 = vadd.f32 %v1409_v17, %v1288_v16  ;;  %v4895_v17 = vld [vmem:[%s5596_s29 + $0xdc] ss:$12 sps:$4 sm:$0xff]  }
 0x697   : > { %v5578_v19 = vadd.f32 %v1411_v18, %v1292_v15  ;;  %v1413_v21 = vpop.f32.mrb[6].mxu0  ;;  %v4893_v18 = vld [vmem:[%s5596_s29 + $0xd8] ss:$12 sps:$4 sm:$0xff]  }
 0x698   : > { %v1415_v23 = vpop.f32.mrb[7].mxu0  ;;  %v5586_v26 = vadd.f32 %v1413_v21, %v1288_v16  ;;  %v4892_v16 = vld [vmem:[%s5596_s29 + $0xc8] ss:$12 sps:$4 sm:$0xff]  }
 0x699   : > { %v5582_v24 = vadd.f32 %v1415_v23, %v1292_v15  ;;  %v1419_v25 = vsel %vm1418_vm3, %v5578_v19, 0.0  ;;  %v4889_v15 = vld [vmem:[%s5596_s29 + $0xc0] ss:$12 sps:$4 sm:$0xff]   ;;  %1777 = vmatpush1.bf16.msra.mxu1 %v4892_v16  ;;  %v4900_v23 = vld [vmem:[%s5596_s29 + $0xf8] ss:$12 sps:$4 sm:$0xff]  }
 0x69a   : > { %v1420_v27 = vadd.f32 %v1419_v25, %v5580_v22  ;;  %1734 = vmatpush1.bf16.msra.mxu0 %v4889_v15  ;;  %1778 = vmatprep.subr.bf16.mxu1 %v5341_v2  ;;  %v4899_v21 = vld [vmem:[%s5596_s29 + $0xf4] ss:$12 sps:$4 sm:$0xff]  }
 0x69b   : > { %v1423_v28 = vsel %vm1418_vm3, %v5582_v24, 0.0  ;;  %1735 = vmatprep.subr.bf16.mxu0 %v4895_v17  ;;  %v4901_v25 = vld [vmem:[%s5596_s29 + $0x108] ss:$12 sps:$4 sm:$0xff]  }
 0x69c   : > { %1421 = vadd.xlane.f32.xlu1 %v1420_v27  ;;  %v1424_v29 = vadd.f32 %v1423_v28, %v5586_v26 }
 0x69e   : > { %1425 = vadd.xlane.f32.xlu0 %v1424_v29  ;;  %1736 = vmatpush1.bf16.msra.mxu0 %v4893_v18 }
 0x69f   : > { %1737 = vmatprep.subr.bf16.mxu0 %v4899_v21 }
 0x729   : > { %v1422_v51 = vpop.xlane.xlu1 %1421 }
 0x72a   : > { %v1427_v52 = vmul.f32 0.0052083335, %v1422_v51 }
 0x72b   : > { %v1426_v53 = vpop.xlane.xlu0 %1425 }
 0x72c   : > { %v1429_v54 = vsub.f32 %v5580_v22, %v1427_v52  ;;  %v1430_v55 = vsub.f32 %v5578_v19, %v1427_v52  ;;  %v1428_v56 = vmul.f32 0.0052083335, %v1426_v53  ;;  %v4896_v19 = vld [vmem:[%s5596_s29 + $0xe0] ss:$12 sps:$4 sm:$0xff]   ;;  %v4897_v22 = vld [vmem:[%s5596_s29 + $0xf0] ss:$12 sps:$4 sm:$0xff]  }
 0x72d   : > { %1779 = vmatpush1.bf16.msra.mxu1 %v4896_v19  ;;  %1738 = vmatpush1.bf16.msra.mxu0 %v4897_v22 }
 0x72e   : > { %v1431_v57 = vsub.f32 %v5586_v26, %v1428_v56  ;;  %v1432_v58 = vsub.f32 %v5582_v24, %v1428_v56  ;;  %v1433_v59 = vmul.f32 %v1429_v54, %v1429_v54  ;;  %v1434_v60 = vmul.f32 %v1430_v55, %v1430_v55  ;;  %1780 = vmatprep.subr.bf16.mxu1 %v5341_v2  ;;  %v4903_v24 = vld [vmem:[%s5596_s29 + $0x10c] ss:$12 sps:$4 sm:$0xff]   ;;  %v4904_v26 = vld [vmem:[%s5596_s29 + $0x110] ss:$12 sps:$4 sm:$0xff]   ;;  %s5682_s29 = scalar_lea.vmem %s6211_s11, %s4777_s26  ;;  %s4779_s26 = smul.u32 768, %s6234_s0 }
 0x72f   : > { %1739 = vmatprep.subr.bf16.mxu0 %v4903_v24  ;;  %v4911_v10 = vld [vmem:[%s5682_s29 + $0x30] ss:$24 sps:$4 sm:$0xff]   ;;  %v4913_v11 = vld [vmem:[%s5682_s29 + $0x34] ss:$24 sps:$4 sm:$0xff]   ;;  %v4919_v15 = vld [vmem:[%s5682_s29 + $0x64] ss:$24 sps:$4 sm:$0xff]  }
 0x730   : > { %v1437_v61 = vsel %vm1418_vm3, %v1434_v60, 0.0  ;;  %v1435_v63 = vmul.f32 %v1431_v57, %v1431_v57  ;;  %v1436_v0 = vmul.f32 %v1432_v58, %v1432_v58  ;;  %v4914_v12 = vld [vmem:[%s5682_s29 + $0x38] ss:$24 sps:$4 sm:$0xff]   ;;  %v4916_v14 = vld [vmem:[%s5682_s29 + $0x3c] ss:$24 sps:$4 sm:$0xff]  }
 0x731   : > { %v1438_v1 = vadd.f32 %v1437_v61, %v1433_v59  ;;  %1781 = vmatpush1.bf16.msra.mxu1 %v4900_v23  ;;  %1740 = vmatpush1.bf16.msra.mxu0 %v4901_v25  ;;  %v4917_v16 = vld [vmem:[%s5682_s29 + $0x60] ss:$24 sps:$4 sm:$0xff]   ;;  %v4922_v17 = vld [vmem:[%s5682_s29 + $0x6c] ss:$24 sps:$4 sm:$0xff]   ;;  %v4928_v21 = vld [vmem:[%s5682_s29 + $0x9c] ss:$24 sps:$4 sm:$0xff]  }
 0x732   : > { %v1441_v4 = vsel %vm1418_vm3, %v1436_v0, 0.0  ;;  %1782 = vmatprep.subr.bf16.mxu1 %v5341_v2  ;;  %v4905_v0 = vld [vmem:[%s5682_s29] ss:$24 sps:$4 sm:$0xff]   ;;  %v4925_v19 = vld [vmem:[%s5682_s29 + $0x94] ss:$24 sps:$4 sm:$0xff]  }
 0x733   : > { %1439 = vadd.xlane.f32.xlu1 %v1438_v1  ;;  %v1442_v6 = vadd.f32 %v1441_v4, %v1435_v63  ;;  %v4907_v1 = vld [vmem:[%s5682_s29 + $0x4] ss:$24 sps:$4 sm:$0xff]   ;;  %v4908_v4 = vld [vmem:[%s5682_s29 + $0x8] ss:$24 sps:$4 sm:$0xff]   ;;  %v4926_v23 = vld [vmem:[%s5682_s29 + $0x98] ss:$24 sps:$4 sm:$0xff]  }
 0x734   : > { %2742 = vmatprep.subr.bf16.mxu0 %v4907_v1  ;;  %v4920_v18 = vld [vmem:[%s5682_s29 + $0x68] ss:$24 sps:$4 sm:$0xff]   ;;  %v4931_v24 = vld [vmem:[%s5682_s29 + $0xc4] ss:$24 sps:$4 sm:$0xff]  }
 0x735   : > { %1443 = vadd.xlane.f32.xlu0 %v1442_v6  ;;  %1783 = vmatpush1.bf16.msra.mxu1 %v4904_v26  ;;  %v4910_v6 = vld [vmem:[%s5682_s29 + $0xc] ss:$24 sps:$4 sm:$0xff]   ;;  %v4923_v22 = vld [vmem:[%s5682_s29 + $0x90] ss:$24 sps:$4 sm:$0xff]   ;;  %v4929_v26 = vld [vmem:[%s5682_s29 + $0xc0] ss:$24 sps:$4 sm:$0xff]  }
 0x736   : > { %2828 = vmatprep.subr.bf16.mxu1 %v4910_v6  ;;  %v4934_v25 = vld [vmem:[%s5682_s29 + $0xcc] ss:$24 sps:$4 sm:$0xff]  }
 0x737   : > { %v4958_v41 = vld [vmem:[%s5682_s29 + $0x18c] ss:$24 sps:$4 sm:$0xff]  }
 0x7c0   : > { %v1440_v27 = vpop.xlane.xlu1 %1439 }
 0x7c1   : > { %v1445_v28 = vmul.f32 0.0052083335, %v1440_v27  ;;  %v4932_v27 = vld [vmem:[%s5682_s29 + $0xc8] ss:$24 sps:$4 sm:$0xff]  }
 0x7c2   : > { %v1444_v29 = vpop.xlane.xlu0 %1443 }
 0x7c3   : > { %v1447_v30 = vadd.f32 1e-05, %v1445_v28  ;;  %v1446_v31 = vmul.f32 0.0052083335, %v1444_v29  ;;  %v4937_v28 = vld [vmem:[%s5682_s29 + $0xf4] ss:$24 sps:$4 sm:$0xff]  }
 0x7c4   : > { %v4940_v29 = vld [vmem:[%s5682_s29 + $0xfc] ss:$24 sps:$4 sm:$0xff]  }
 0x7c5   : > { %5292 = vrsqrt.f32 %v1447_v30  ;;  %v1448_v32 = vadd.f32 1e-05, %v1446_v31  ;;  %v4935_v30 = vld [vmem:[%s5682_s29 + $0xf0] ss:$24 sps:$4 sm:$0xff]  }
 0x7c6   : > { %v4938_v31 = vld [vmem:[%s5682_s29 + $0xf8] ss:$24 sps:$4 sm:$0xff]  }
 0x7c7   : > { %5294 = vrsqrt.f32 %v1448_v32  ;;  %v4943_v32 = vld [vmem:[%s5682_s29 + $0x124] ss:$24 sps:$4 sm:$0xff]  }
 0x7cf   : > { %v5293_v33 = vpop.eup %5292 }
 0x7d0   : > { %v1452_v35 = vmul.f32 %v5293_v33, %v1430_v55  ;;  %v1451_v37 = vmul.f32 %v5293_v33, %v1429_v54  ;;  %v4946_v33 = vld [vmem:[%s5682_s29 + $0x12c] ss:$24 sps:$4 sm:$0xff]  }
 0x7d1   : > { %v5295_v34 = vpop.eup %5294 }
 0x7d2   : > { %v1454_v36 = vmul.f32 %v5295_v34, %v1432_v58  ;;  %v1453_v38 = vmul.f32 %v5295_v34, %v1431_v57  ;;  %v4941_v34 = vld [vmem:[%s5682_s29 + $0x120] ss:$24 sps:$4 sm:$0xff]  }
 0x7d4   : > { %v1456_v39 = vpack.c.bf16 %v1454_v36, %v1452_v35  ;;  %v1455_v40 = vpack.c.bf16 %v1453_v38, %v1451_v37  ;;  %v4944_v35 = vld [vmem:[%s5682_s29 + $0x128] ss:$24 sps:$4 sm:$0xff]   ;;  %v4949_v36 = vld [vmem:[%s5682_s29 + $0x154] ss:$24 sps:$4 sm:$0xff]  }
 0x7d5   : > { %v4952_v37 = vld [vmem:[%s5682_s29 + $0x15c] ss:$24 sps:$4 sm:$0xff]   ;;  %v4947_v38 = vld [vmem:[%s5682_s29 + $0x150] ss:$24 sps:$4 sm:$0xff]  }
 0x7d6   : > { %4448 = vmatprep.mubr.msk.bf16.mxu0 %vm1418_vm3, %v1456_v39  ;;  %4449 = vmatprep.mubr.msk.bf16.mxu1 %vm1418_vm3, %v1456_v39  ;;  %v4950_v39 = vld [vmem:[%s5682_s29 + $0x158] ss:$24 sps:$4 sm:$0xff]  }
 0x7d7   : > { %1750 = vmatmul.mubr.bf16.vlgmr.msra.gmra.mrb[8].mxu0 %v1455_v40  ;;  %1793 = vmatmul.mubr.bf16.vlgmr.msra.gmra.mrb[0].mxu1 %v1455_v40  ;;  %v4955_v40 = vld [vmem:[%s5682_s29 + $0x184] ss:$24 sps:$4 sm:$0xff]  }
 0x7d8   : > { %2743 = vmatpush1.bf16.msra.mxu0 %v4905_v0  ;;  %2829 = vmatpush1.bf16.msra.mxu1 %v4908_v4 }
 0x7d9   : > { %2744 = vmatprep.subr.bf16.mxu0 %v4913_v11  ;;  %2830 = vmatprep.subr.bf16.mxu1 %v4916_v14 }
 0x7dc   : > { %2745 = vmatpush1.bf16.msra.mxu0 %v4911_v10  ;;  %2831 = vmatpush1.bf16.msra.mxu1 %v4914_v12 }
 0x7dd   : > { %2746 = vmatprep.subr.bf16.mxu0 %v4919_v15  ;;  %2832 = vmatprep.subr.bf16.mxu1 %v4922_v17  ;;  %v4976_v17 = vld [vmem:[%s5682_s29 + $0x21c] ss:$24 sps:$4 sm:$0xff]  }
 0x7e0   : > { %2747 = vmatpush1.bf16.msra.mxu0 %v4917_v16  ;;  %2833 = vmatpush1.bf16.msra.mxu1 %v4920_v18  ;;  %v4973_v16 = vld [vmem:[%s5682_s29 + $0x214] ss:$24 sps:$4 sm:$0xff]   ;;  %v4971_v18 = vld [vmem:[%s5682_s29 + $0x210] ss:$24 sps:$4 sm:$0xff]  }
 0x7e1   : > { %2748 = vmatprep.subr.bf16.mxu0 %v4925_v19  ;;  %2834 = vmatprep.subr.bf16.mxu1 %v4928_v21  ;;  %v4974_v19 = vld [vmem:[%s5682_s29 + $0x218] ss:$24 sps:$4 sm:$0xff]   ;;  %v4979_v21 = vld [vmem:[%s5682_s29 + $0x244] ss:$24 sps:$4 sm:$0xff]  }
 0x7e4   : > { %2749 = vmatpush1.bf16.msra.mxu0 %v4923_v22  ;;  %2835 = vmatpush1.bf16.msra.mxu1 %v4926_v23  ;;  %v4982_v22 = vld [vmem:[%s5682_s29 + $0x24c] ss:$24 sps:$4 sm:$0xff]   ;;  %v4977_v23 = vld [vmem:[%s5682_s29 + $0x240] ss:$24 sps:$4 sm:$0xff]  }
 0x7e5   : > { %2750 = vmatprep.subr.bf16.mxu0 %v4931_v24  ;;  %2836 = vmatprep.subr.bf16.mxu1 %v4934_v25  ;;  %v4980_v24 = vld [vmem:[%s5682_s29 + $0x248] ss:$24 sps:$4 sm:$0xff]   ;;  %v4985_v25 = vld [vmem:[%s5682_s29 + $0x274] ss:$24 sps:$4 sm:$0xff]  }
 0x7e8   : > { %2751 = vmatpush1.bf16.msra.mxu0 %v4929_v26  ;;  %2837 = vmatpush1.bf16.msra.mxu1 %v4932_v27  ;;  %v4983_v26 = vld [vmem:[%s5682_s29 + $0x270] ss:$24 sps:$4 sm:$0xff]  }
 0x7e9   : > { %2752 = vmatprep.subr.bf16.mxu0 %v4937_v28  ;;  %2838 = vmatprep.subr.bf16.mxu1 %v4940_v29  ;;  %v4986_v27 = vld [vmem:[%s5682_s29 + $0x278] ss:$24 sps:$4 sm:$0xff]   ;;  %v4988_v28 = vld [vmem:[%s5682_s29 + $0x27c] ss:$24 sps:$4 sm:$0xff]  }
 0x7ea   : > { %v4991_v29 = vld [vmem:[%s5682_s29 + $0x2a4] ss:$24 sps:$4 sm:$0xff]  }
 0x7ec   : > { %2753 = vmatpush1.bf16.msra.mxu0 %v4935_v30  ;;  %2839 = vmatpush1.bf16.msra.mxu1 %v4938_v31  ;;  %v4994_v30 = vld [vmem:[%s5682_s29 + $0x2ac] ss:$24 sps:$4 sm:$0xff]   ;;  %v4989_v31 = vld [vmem:[%s5682_s29 + $0x2a0] ss:$24 sps:$4 sm:$0xff]  }
 0x7ed   : > { %2754 = vmatprep.subr.bf16.mxu0 %v4943_v32  ;;  %2840 = vmatprep.subr.bf16.mxu1 %v4946_v33  ;;  %v4992_v32 = vld [vmem:[%s5682_s29 + $0x2a8] ss:$24 sps:$4 sm:$0xff]   ;;  %v4997_v33 = vld [vmem:[%s5682_s29 + $0x2d4] ss:$24 sps:$4 sm:$0xff]  }
 0x7f0   : > { %2755 = vmatpush1.bf16.msra.mxu0 %v4941_v34  ;;  %2841 = vmatpush1.bf16.msra.mxu1 %v4944_v35  ;;  %v5000_v34 = vld [vmem:[%s5682_s29 + $0x2dc] ss:$24 sps:$4 sm:$0xff]   ;;  %v4995_v35 = vld [vmem:[%s5682_s29 + $0x2d0] ss:$24 sps:$4 sm:$0xff]  }
 0x7f1   : > { %2756 = vmatprep.subr.bf16.mxu0 %v4949_v36  ;;  %2842 = vmatprep.subr.bf16.mxu1 %v4952_v37  ;;  %v4998_v36 = vld [vmem:[%s5682_s29 + $0x2d8] ss:$24 sps:$4 sm:$0xff]   ;;  %v5003_v37 = vld [vmem:[%s5682_s29 + $0x304] ss:$24 sps:$4 sm:$0xff]  }
 0x7f4   : > { %2757 = vmatpush1.bf16.msra.mxu0 %v4947_v38  ;;  %2843 = vmatpush1.bf16.msra.mxu1 %v4950_v39  ;;  %v5006_v38 = vld [vmem:[%s5682_s29 + $0x30c] ss:$24 sps:$4 sm:$0xff]  }
 0x7f5   : > { %2758 = vmatprep.subr.bf16.mxu0 %v4955_v40  ;;  %2844 = vmatprep.subr.bf16.mxu1 %v4958_v41 }
 0x8aa   : > { %v1751_v44 = vpop.f32.mrb[8].mxu0  ;;  %v1794_v46 = vpop.f32.mrb[0].mxu1 }
 0x8ab   : > { %v5660_v47 = vadd.f32 %v1751_v44, %v1510_v42  ;;  %v1753_v48 = vpop.f32.mrb[9].mxu0  ;;  %v1796_v49 = vpop.f32.mrb[1].mxu1  ;;  %v5666_v56 = vadd.f32 %v1794_v46, %v1518_v45  ;;  %v4961_v44 = vld [vmem:[%s5682_s29 + $0x1b4] ss:$24 sps:$4 sm:$0xff]   ;;  %v4959_v46 = vld [vmem:[%s5682_s29 + $0x1b0] ss:$24 sps:$4 sm:$0xff]  }
 0x8ac   : > { %v5662_v50 = vadd.f32 %v1753_v48, %v1514_v43  ;;  %v1755_v51 = vpop.f32.mrb[10].mxu0  ;;  %v1797_v52 = vpop.f32.mrb[2].mxu1  ;;  %v4962_v48 = vld [vmem:[%s5682_s29 + $0x1b8] ss:$24 sps:$4 sm:$0xff]   ;;  %v4967_v49 = vld [vmem:[%s5682_s29 + $0x1e4] ss:$24 sps:$4 sm:$0xff]  }
 0x8ad   : > { %v5664_v53 = vadd.f32 %v1755_v51, %v1510_v42  ;;  %v1757_v54 = vpop.f32.mrb[11].mxu0  ;;  %v1799_v55 = vpop.f32.mrb[3].mxu1  ;;  %v5672_v59 = vadd.f32 %v1797_v52, %v1518_v45  ;;  %v4953_v42 = vld [vmem:[%s5682_s29 + $0x180] ss:$24 sps:$4 sm:$0xff]   ;;  %v4964_v45 = vld [vmem:[%s5682_s29 + $0x1bc] ss:$24 sps:$4 sm:$0xff]  }
 0x8ae   : > { %v1801_v57 = vadd.f32 %v5662_v50, %v5660_v47  ;;  %v5670_v58 = vadd.f32 %v1757_v54, %v1514_v43  ;;  %v4956_v43 = vld [vmem:[%s5682_s29 + $0x188] ss:$24 sps:$4 sm:$0xff]   ;;  %2759 = vmatpush1.bf16.msra.mxu0 %v4953_v42  ;;  %v4970_v51 = vld [vmem:[%s5682_s29 + $0x1ec] ss:$24 sps:$4 sm:$0xff]  }
 0x8af   : > { %2845 = vmatpush1.bf16.msra.mxu1 %v4956_v43  ;;  %2760 = vmatprep.subr.bf16.mxu0 %v4961_v44  ;;  %v4965_v52 = vld [vmem:[%s5682_s29 + $0x1e0] ss:$24 sps:$4 sm:$0xff]  }
 0x8b0   : > { %v1805_v60 = vadd.f32 %v5670_v58, %v5664_v53  ;;  %v1802_v61 = vadd.f32 %v1801_v57, %v5666_v56  ;;  %2846 = vmatprep.subr.bf16.mxu1 %v4964_v45  ;;  %v4968_v54 = vld [vmem:[%s5682_s29 + $0x1e8] ss:$24 sps:$4 sm:$0xff]  }
 0x8b2   : > { %1803 = vadd.xlane.f32.xlu1 %v1802_v61  ;;  %v1806_v63 = vadd.f32 %v1805_v60, %v5672_v59  ;;  %2761 = vmatpush1.bf16.msra.mxu0 %v4959_v46 }
 0x8b3   : > { %2847 = vmatpush1.bf16.msra.mxu1 %v4962_v48  ;;  %2762 = vmatprep.subr.bf16.mxu0 %v4967_v49 }
 0x8b4   : > { %1807 = vadd.xlane.f32.xlu0 %v1806_v63  ;;  %2848 = vmatprep.subr.bf16.mxu1 %v4970_v51 }
 0x8b6   : > { %2763 = vmatpush1.bf16.msra.mxu0 %v4965_v52 }
 0x8b7   : > { %2849 = vmatpush1.bf16.msra.mxu1 %v4968_v54  ;;  %2764 = vmatprep.subr.bf16.mxu0 %v4973_v16  ;;  %v5028_v16 = vld [vmem:[%s5682_s29 + $0x3c8] ss:$24 sps:$4 sm:$0xff]  }
 0x8b8   : > { %2850 = vmatprep.subr.bf16.mxu1 %v4976_v17  ;;  %v5033_v17 = vld [vmem:[%s5682_s29 + $0x3f4] ss:$24 sps:$4 sm:$0xff]  }
 0x8ba   : > { %2765 = vmatpush1.bf16.msra.mxu0 %v4971_v18  ;;  %v5036_v18 = vld [vmem:[%s5682_s29 + $0x3fc] ss:$24 sps:$4 sm:$0xff]  }
 0x8bb   : > { %2851 = vmatpush1.bf16.msra.mxu1 %v4974_v19  ;;  %2766 = vmatprep.subr.bf16.mxu0 %v4979_v21  ;;  %v5031_v19 = vld [vmem:[%s5682_s29 + $0x3f0] ss:$24 sps:$4 sm:$0xff]  }
 0x8bc   : > { %2852 = vmatprep.subr.bf16.mxu1 %v4982_v22  ;;  %v5034_v21 = vld [vmem:[%s5682_s29 + $0x3f8] ss:$24 sps:$4 sm:$0xff]   ;;  %v5039_v22 = vld [vmem:[%s5682_s29 + $0x424] ss:$24 sps:$4 sm:$0xff]  }
 0x8be   : > { %2767 = vmatpush1.bf16.msra.mxu0 %v4977_v23  ;;  %v5042_v23 = vld [vmem:[%s5682_s29 + $0x42c] ss:$24 sps:$4 sm:$0xff]  }
 0x8bf   : > { %2853 = vmatpush1.bf16.msra.mxu1 %v4980_v24  ;;  %2768 = vmatprep.subr.bf16.mxu0 %v4985_v25  ;;  %v5037_v24 = vld [vmem:[%s5682_s29 + $0x420] ss:$24 sps:$4 sm:$0xff]  }
 0x8c0   : > { %2854 = vmatprep.subr.bf16.mxu1 %v4988_v28  ;;  %v5040_v25 = vld [vmem:[%s5682_s29 + $0x428] ss:$24 sps:$4 sm:$0xff]  }
 0x8c1   : > { %v5043_v28 = vld [vmem:[%s5682_s29 + $0x450] ss:$24 sps:$4 sm:$0xff]  }
 0x8c2   : > { %2769 = vmatpush1.bf16.msra.mxu0 %v4983_v26  ;;  %v5045_v26 = vld [vmem:[%s5682_s29 + $0x454] ss:$24 sps:$4 sm:$0xff]  }
 0x8c3   : > { %2855 = vmatpush1.bf16.msra.mxu1 %v4986_v27  ;;  %2770 = vmatprep.subr.bf16.mxu0 %v4991_v29  ;;  %v5048_v27 = vld [vmem:[%s5682_s29 + $0x45c] ss:$24 sps:$4 sm:$0xff]   ;;  %v5046_v29 = vld [vmem:[%s5682_s29 + $0x458] ss:$24 sps:$4 sm:$0xff]  }
 0x8c4   : > { %2856 = vmatprep.subr.bf16.mxu1 %v4994_v30 }
 0x8c6   : > { %2771 = vmatpush1.bf16.msra.mxu0 %v4989_v31  ;;  %v5051_v31 = vld [vmem:[%s5682_s29 + $0x14] ss:$24 sps:$4 sm:$0xff]  }
 0x8c7   : > { %2857 = vmatpush1.bf16.msra.mxu1 %v4992_v32  ;;  %2772 = vmatprep.subr.bf16.mxu0 %v4997_v33  ;;  %v5049_v33 = vld [vmem:[%s5682_s29 + $0x10] ss:$24 sps:$4 sm:$0xff]  }
 0x8c8   : > { %2858 = vmatprep.subr.bf16.mxu1 %v5000_v34 }
 0x8ca   : > { %2773 = vmatpush1.bf16.msra.mxu0 %v4995_v35  ;;  %v5054_v35 = vld [vmem:[%s5682_s29 + $0x44] ss:$24 sps:$4 sm:$0xff]  }
 0x8cb   : > { %2859 = vmatpush1.bf16.msra.mxu1 %v4998_v36  ;;  %2785 = vmatprep.subr.bf16.mxu0 %v5003_v37  ;;  %v5055_v36 = vld [vmem:[%s5682_s29 + $0x70] ss:$24 sps:$4 sm:$0xff]   ;;  %v5060_v37 = vld [vmem:[%s5682_s29 + $0xa4] ss:$24 sps:$4 sm:$0xff]  }
 0x8cc   : > { %2871 = vmatprep.subr.bf16.mxu1 %v5006_v38  ;;  %v5058_v38 = vld [vmem:[%s5682_s29 + $0xa0] ss:$24 sps:$4 sm:$0xff]  }
 0x93f   : > { %v1804_v55 = vpop.xlane.xlu1 %1803 }
 0x940   : > { %v1809_v57 = vmul.f32 0.0026041667, %v1804_v55  ;;  %v5001_v55 = vld [vmem:[%s5682_s29 + $0x300] ss:$24 sps:$4 sm:$0xff]  }
 0x941   : > { %v1808_v60 = vpop.xlane.xlu0 %1807 }
 0x942   : > { %v5729_v61 = vsub.f32 %v5660_v47, %v1809_v57  ;;  %v5732_v63 = vsub.f32 %v5662_v50, %v1809_v57  ;;  %v1810_v0 = vmul.f32 0.0026041667, %v1808_v60  ;;  %v5735_v1 = vsub.f32 %v5666_v56, %v1809_v57  ;;  %v5004_v57 = vld [vmem:[%s5682_s29 + $0x308] ss:$24 sps:$4 sm:$0xff]  }
 0x944   : > { %v5738_v4 = vsub.f32 %v5664_v53, %v1810_v0  ;;  %v5741_v6 = vsub.f32 %v5670_v58, %v1810_v0  ;;  %v5744_v10 = vsub.f32 %v5672_v59, %v1810_v0  ;;  %v1817_v47 = vmul.f32 %v5729_v61, %v5729_v61  ;;  %v5012_v0 = vld [vmem:[%s5682_s29 + $0x33c] ss:$24 sps:$4 sm:$0xff]  }
 0x945   : > { %v1818_v50 = vmul.f32 %v5732_v63, %v5732_v63  ;;  %v1819_v58 = vmul.f32 %v5735_v1, %v5735_v1 }
 0x946   : > { %v1820_v56 = vmul.f32 %v5738_v4, %v5738_v4  ;;  %v1821_v53 = vmul.f32 %v5741_v6, %v5741_v6  ;;  %v1822_v59 = vmul.f32 %v5744_v10, %v5744_v10 }
 0x947   : > { %v1823_v11 = vadd.f32 %v1818_v50, %v1817_v47  ;;  %v5018_v47 = vld [vmem:[%s5682_s29 + $0x36c] ss:$24 sps:$4 sm:$0xff]   ;;  %v5013_v50 = vld [vmem:[%s5682_s29 + $0x360] ss:$24 sps:$4 sm:$0xff]  }
 0x948   : > { %v1827_v12 = vadd.f32 %v1821_v53, %v1820_v56  ;;  %v5016_v56 = vld [vmem:[%s5682_s29 + $0x368] ss:$24 sps:$4 sm:$0xff]   ;;  %v5021_v53 = vld [vmem:[%s5682_s29 + $0x394] ss:$24 sps:$4 sm:$0xff]  }
 0x949   : > { %v1824_v14 = vadd.f32 %v1823_v11, %v1819_v58  ;;  %v5024_v58 = vld [vmem:[%s5682_s29 + $0x39c] ss:$24 sps:$4 sm:$0xff]   ;;  %v5019_v11 = vld [vmem:[%s5682_s29 + $0x390] ss:$24 sps:$4 sm:$0xff]  }
 0x94a   : > { %v1828_v15 = vadd.f32 %v1827_v12, %v1822_v59  ;;  %v5022_v59 = vld [vmem:[%s5682_s29 + $0x398] ss:$24 sps:$4 sm:$0xff]   ;;  %v5027_v12 = vld [vmem:[%s5682_s29 + $0x3c4] ss:$24 sps:$4 sm:$0xff]  }
 0x94b   : > { %1825 = vadd.xlane.f32.xlu1 %v1824_v14  ;;  %v5030_v14 = vld [vmem:[%s5682_s29 + $0x3cc] ss:$24 sps:$4 sm:$0xff]  }
 0x94c   : > { %1829 = vadd.xlane.f32.xlu0 %v1828_v15  ;;  %v5025_v15 = vld [vmem:[%s5682_s29 + $0x3c0] ss:$24 sps:$4 sm:$0xff]  }
 0x9d8   : > { %v1826_v39 = vpop.xlane.xlu1 %1825 }
 0x9d9   : > { %v1831_v40 = vmul.f32 0.0026041667, %v1826_v39  ;;  %v1830_v41 = vpop.xlane.xlu0 %1829  ;;  %v5063_v39 = vld [vmem:[%s5682_s29 + $0xd4] ss:$24 sps:$4 sm:$0xff]  }
 0x9da   : > { %v1832_v42 = vmul.f32 0.0026041667, %v1830_v41  ;;  %v5066_v41 = vld [vmem:[%s5682_s29 + $0x104] ss:$24 sps:$4 sm:$0xff]  }
 0x9db   : > { %v1833_v43 = vadd.f32 1e-05, %v1831_v40  ;;  %v5061_v40 = vld [vmem:[%s5682_s29 + $0xd0] ss:$24 sps:$4 sm:$0xff]  }
 0x9dc   : > { %v1834_v44 = vadd.f32 1e-05, %v1832_v42  ;;  %v5064_v42 = vld [vmem:[%s5682_s29 + $0x100] ss:$24 sps:$4 sm:$0xff]  }
 0x9dd   : > { %5296 = vrsqrt.f32 %v1833_v43  ;;  %v5069_v43 = vld [vmem:[%s5682_s29 + $0x134] ss:$24 sps:$4 sm:$0xff]  }
 0x9de   : > { %5298 = vrsqrt.f32 %v1834_v44  ;;  %v5067_v44 = vld [vmem:[%s5682_s29 + $0x130] ss:$24 sps:$4 sm:$0xff]  }
 0x9e7   : > { %v5780_v45 = vpop.eup %5296 }
 0x9e8   : > { %v5782_v46 = vpop.eup %5298  ;;  %v1838_v48 = vmul.f32 %v5780_v45, %v5732_v63  ;;  %v1837_v51 = vmul.f32 %v5780_v45, %v5729_v61  ;;  %v5009_v63 = vld [vmem:[%s5682_s29 + $0x334] ss:$24 sps:$4 sm:$0xff]   ;;  %v5007_v61 = vld [vmem:[%s5682_s29 + $0x330] ss:$24 sps:$4 sm:$0xff]   ;;  %v1839_v32 = vmul.f32 %v5780_v45, %v5735_v1  ;;  %v5052_v1 = vld [vmem:[%s5682_s29 + $0x40] ss:$24 sps:$4 sm:$0xff]  }
 0x9e9   : > { %v1841_v49 = vmul.f32 %v5782_v46, %v5741_v6  ;;  %v1840_v52 = vmul.f32 %v5782_v46, %v5738_v4  ;;  %v5010_v4 = vld [vmem:[%s5682_s29 + $0x338] ss:$24 sps:$4 sm:$0xff]   ;;  %v5015_v6 = vld [vmem:[%s5682_s29 + $0x364] ss:$24 sps:$4 sm:$0xff]   ;;  %v1842_v30 = vmul.f32 %v5782_v46, %v5744_v10  ;;  %v5057_v10 = vld [vmem:[%s5682_s29 + $0x74] ss:$24 sps:$4 sm:$0xff]  }
 0x9ea   : > { %v5072_v45 = vld [vmem:[%s5682_s29 + $0x164] ss:$24 sps:$4 sm:$0xff]   ;;  %v5070_v46 = vld [vmem:[%s5682_s29 + $0x160] ss:$24 sps:$4 sm:$0xff]  }
 0x9eb   : > { %v5792_v54 = vpack.c.bf16 %v1841_v49, %v1838_v48  ;;  %v5796_v60 = vpack.c.bf16 %v1840_v52, %v1837_v51  ;;  %v5838_v34 = vpack.c.bf16 %v1842_v30, %v1839_v32  ;;  %v5075_v48 = vld [vmem:[%s5682_s29 + $0x194] ss:$24 sps:$4 sm:$0xff]   ;;  %v5073_v49 = vld [vmem:[%s5682_s29 + $0x190] ss:$24 sps:$4 sm:$0xff]   ;;  %v5078_v51 = vld [vmem:[%s5682_s29 + $0x1c4] ss:$24 sps:$4 sm:$0xff]  }
 0x9ec   : > { %v5076_v52 = vld [vmem:[%s5682_s29 + $0x1c0] ss:$24 sps:$4 sm:$0xff]  }
 0x9ed   : > { %2774 = vmatprep.mubr.bf16.mxu0 %v5792_v54  ;;  %2860 = vmatprep.mubr.bf16.mxu1 %v5792_v54 }
 0x9ee   : > { %2775 = vmatmul.mubr.bf16.vlgmr.msra.gmra.mrb[12].mxu0 %v5796_v60  ;;  %2861 = vmatmul.mubr.bf16.vlgmr.msra.gmra.mrb[4].mxu1 %v5796_v60 }
 0x9ef   : > { %2786 = vmatpush1.bf16.msra.mxu0 %v5001_v55  ;;  %2872 = vmatpush1.bf16.msra.mxu1 %v5004_v57  ;;  %v5079_v55 = vld [vmem:[%s5682_s29 + $0x1f0] ss:$24 sps:$4 sm:$0xff]   ;;  %v5084_v57 = vld [vmem:[%s5682_s29 + $0x224] ss:$24 sps:$4 sm:$0xff]  }
 0x9f0   : > { %2787 = vmatprep.subr.bf16.mxu0 %v5009_v63  ;;  %2873 = vmatprep.subr.bf16.mxu1 %v5012_v0  ;;  %v5082_v63 = vld [vmem:[%s5682_s29 + $0x220] ss:$24 sps:$4 sm:$0xff]   ;;  %v5087_v0 = vld [vmem:[%s5682_s29 + $0x254] ss:$24 sps:$4 sm:$0xff]  }
 0x9f1   : > { %2817 = vmatprep.mubr.bf16.mxu0 %v5341_v2  ;;  %2903 = vmatprep.mubr.bf16.mxu1 %v5341_v2 }
 0x9f3   : > { %2788 = vmatpush1.bf16.msra.mxu0 %v5007_v61  ;;  %2874 = vmatpush1.bf16.msra.mxu1 %v5010_v4  ;;  %v5085_v61 = vld [vmem:[%s5682_s29 + $0x250] ss:$24 sps:$4 sm:$0xff]   ;;  %v5090_v4 = vld [vmem:[%s5682_s29 + $0x284] ss:$24 sps:$4 sm:$0xff]  }
 0x9f4   : > { %2789 = vmatprep.subr.bf16.mxu0 %v5015_v6  ;;  %2875 = vmatprep.subr.bf16.mxu1 %v5018_v47  ;;  %v5088_v6 = vld [vmem:[%s5682_s29 + $0x280] ss:$24 sps:$4 sm:$0xff]   ;;  %v5093_v47 = vld [vmem:[%s5682_s29 + $0x2b4] ss:$24 sps:$4 sm:$0xff]  }
 0x9f7   : > { %2790 = vmatpush1.bf16.msra.mxu0 %v5013_v50  ;;  %2876 = vmatpush1.bf16.msra.mxu1 %v5016_v56  ;;  %v5091_v50 = vld [vmem:[%s5682_s29 + $0x2b0] ss:$24 sps:$4 sm:$0xff]   ;;  %v5096_v56 = vld [vmem:[%s5682_s29 + $0x2e4] ss:$24 sps:$4 sm:$0xff]  }
 0x9f8   : > { %2791 = vmatprep.subr.bf16.mxu0 %v5021_v53  ;;  %2877 = vmatprep.subr.bf16.mxu1 %v5024_v58  ;;  %v5094_v53 = vld [vmem:[%s5682_s29 + $0x2e0] ss:$24 sps:$4 sm:$0xff]   ;;  %v5099_v58 = vld [vmem:[%s5682_s29 + $0x314] ss:$24 sps:$4 sm:$0xff]  }
 0x9fb   : > { %2792 = vmatpush1.bf16.msra.mxu0 %v5019_v11  ;;  %2878 = vmatpush1.bf16.msra.mxu1 %v5022_v59  ;;  %v5097_v11 = vld [vmem:[%s5682_s29 + $0x310] ss:$24 sps:$4 sm:$0xff]   ;;  %v5102_v59 = vld [vmem:[%s5682_s29 + $0x344] ss:$24 sps:$4 sm:$0xff]  }
 0x9fc   : > { %2793 = vmatprep.subr.bf16.mxu0 %v5027_v12  ;;  %2879 = vmatprep.subr.bf16.mxu1 %v5030_v14  ;;  %v5100_v12 = vld [vmem:[%s5682_s29 + $0x340] ss:$24 sps:$4 sm:$0xff]   ;;  %v5105_v14 = vld [vmem:[%s5682_s29 + $0x374] ss:$24 sps:$4 sm:$0xff]  }
 0x9ff   : > { %2794 = vmatpush1.bf16.msra.mxu0 %v5025_v15  ;;  %2880 = vmatpush1.bf16.msra.mxu1 %v5028_v16  ;;  %v5103_v15 = vld [vmem:[%s5682_s29 + $0x370] ss:$24 sps:$4 sm:$0xff]   ;;  %v5108_v16 = vld [vmem:[%s5682_s29 + $0x3a4] ss:$24 sps:$4 sm:$0xff]  }
 0xa00   : > { %2795 = vmatprep.subr.bf16.mxu0 %v5033_v17  ;;  %2881 = vmatprep.subr.bf16.mxu1 %v5036_v18  ;;  %v5106_v17 = vld [vmem:[%s5682_s29 + $0x3a0] ss:$24 sps:$4 sm:$0xff]   ;;  %v5109_v18 = vld [vmem:[%s5682_s29 + $0x3d0] ss:$24 sps:$4 sm:$0xff]  }
 0xa03   : > { %2796 = vmatpush1.bf16.msra.mxu0 %v5031_v19  ;;  %2882 = vmatpush1.bf16.msra.mxu1 %v5034_v21  ;;  %v5114_v19 = vld [vmem:[%s5682_s29 + $0x404] ss:$24 sps:$4 sm:$0xff]   ;;  %v5112_v21 = vld [vmem:[%s5682_s29 + $0x400] ss:$24 sps:$4 sm:$0xff]  }
 0xa04   : > { %2797 = vmatprep.subr.bf16.mxu0 %v5039_v22  ;;  %2883 = vmatprep.subr.bf16.mxu1 %v5042_v23  ;;  %v5117_v22 = vld [vmem:[%s5682_s29 + $0x434] ss:$24 sps:$4 sm:$0xff]   ;;  %v5115_v23 = vld [vmem:[%s5682_s29 + $0x430] ss:$24 sps:$4 sm:$0xff]  }
 0xa07   : > { %2798 = vmatpush1.bf16.msra.mxu0 %v5037_v24  ;;  %2884 = vmatpush1.bf16.msra.mxu1 %v5040_v25  ;;  %v5120_v24 = vld [vmem:[%s5682_s29 + $0x464] ss:$24 sps:$4 sm:$0xff]   ;;  %v5118_v25 = vld [vmem:[%s5682_s29 + $0x460] ss:$24 sps:$4 sm:$0xff]  }
 0xa08   : > { %2799 = vmatprep.subr.bf16.mxu0 %v5045_v26  ;;  %2885 = vmatprep.subr.bf16.mxu1 %v5048_v27 }
 0xa0b   : > { %2800 = vmatpush1.bf16.msra.mxu0 %v5043_v28  ;;  %2886 = vmatpush1.bf16.msra.mxu1 %v5046_v29 }
 0xa0c   : > { %2914 = vmatprep.subr.bf16.mxu0 %v5051_v31 }
 0xa0e   : > { %2818 = vmatmul.mubr.bf16.vlgmr.msra.gmra.mrb[12].mxu0 %v5838_v34  ;;  %2904 = vmatmul.mubr.bf16.vlgmr.msra.gmra.mrb[4].mxu1 %v5838_v34 }
 0xa0f   : > { %2915 = vmatpush1.bf16.msra.mxu0 %v5049_v33  ;;  %2946 = vmatprep.mubr.bf16.mxu0 %v5792_v54  ;;  %v5081_v54 = vld [vmem:[%s5682_s29 + $0x1f4] ss:$24 sps:$4 sm:$0xff]  }
 0xa10   : > { %2916 = vmatprep.subr.bf16.mxu0 %v5054_v35  ;;  %v1990_v35 = vld [vmem:[%s901_s3] sm:$0x3f]  ;;  %s923_s3 = scalar_lea.vmem %s6217_s17, %s4781_s24  ;;  %s935_s24 = scalar_lea.vmem %s6219_s19, %s4711_s1 }
 0xa13   : > { %2917 = vmatpush1.bf16.msra.mxu0 %v5052_v1  ;;  %v1995_v1 = vrot.slane %v1990_v35, %v5490_v9 }
 0xa14   : > { %2918 = vmatprep.subr.bf16.mxu0 %v5057_v10  ;;  %v1999_v10 = vrot.slane %v1990_v35, %v5487_v7 }
 0xa17   : > { %2919 = vmatpush1.bf16.msra.mxu0 %v5055_v36 }
 0xa18   : > { %2920 = vmatprep.subr.bf16.mxu0 %v5060_v37  ;;  %v2003_v37 = vrot.slane %v1990_v35, %v5509_v62  ;;  %v2011_v62 = vrot.slane %v1990_v35, %v1095_v8 }
 0xa1b   : > { %2921 = vmatpush1.bf16.msra.mxu0 %v5058_v38 }
 0xa1c   : > { %2922 = vmatprep.subr.bf16.mxu0 %v5063_v39 }
 0xa1f   : > { %2923 = vmatpush1.bf16.msra.mxu0 %v5061_v40 }
 0xa20   : > { %2924 = vmatprep.subr.bf16.mxu0 %v5066_v41 }
 0xa23   : > { %2925 = vmatpush1.bf16.msra.mxu0 %v5064_v42  ;;  %v2007_v42 = vrot.slane %v1990_v35, %v1079_v3 }
 0xa24   : > { %2926 = vmatprep.subr.bf16.mxu0 %v5069_v43 }
 0xa27   : > { %2927 = vmatpush1.bf16.msra.mxu0 %v5067_v44 }
 0xa28   : > { %2928 = vmatprep.subr.bf16.mxu0 %v5072_v45 }
 0xa2b   : > { %2929 = vmatpush1.bf16.msra.mxu0 %v5070_v46  ;;  %v2015_v46 = vrot.slane %v1990_v35, %v1111_v20 }
 0xa2c   : > { %2930 = vmatprep.subr.bf16.mxu0 %v5075_v48 }
 0xa2f   : > { %2931 = vmatpush1.bf16.msra.mxu0 %v5073_v49 }
 0xa30   : > { %2932 = vmatprep.subr.bf16.mxu0 %v5078_v51 }
 0xa33   : > { %2933 = vmatpush1.bf16.msra.mxu0 %v5076_v52 }
 0xa34   : > { %2934 = vmatprep.subr.bf16.mxu0 %v5081_v54 }
 0xa37   : > { %2935 = vmatpush1.bf16.msra.mxu0 %v5079_v55 }
 0xa38   : > { %2936 = vmatprep.subr.bf16.mxu0 %v5084_v57 }
 0xa3b   : > { %2937 = vmatpush1.bf16.msra.mxu0 %v5082_v63 }
 0xa3c   : > { %2938 = vmatprep.subr.bf16.mxu0 %v5087_v0 }
 0xa3f   : > { %2939 = vmatpush1.bf16.msra.mxu0 %v5085_v61 }
 0xa40   : > { %2940 = vmatprep.subr.bf16.mxu0 %v5090_v4 }
 0xa43   : > { %2941 = vmatpush1.bf16.msra.mxu0 %v5088_v6 }
 0xa44   : > { %2942 = vmatprep.subr.bf16.mxu0 %v5093_v47 }
 0xa47   : > { %2943 = vmatpush1.bf16.msra.mxu0 %v5091_v50 }
 0xa48   : > { %2944 = vmatprep.subr.bf16.mxu0 %v5096_v56 }
 0xa4b   : > { %2945 = vmatpush1.bf16.msra.mxu0 %v5094_v53 }
 0xa4c   : > { %2957 = vmatprep.subr.bf16.mxu0 %v5099_v58 }
 0xa4e   : > { %2947 = vmatmul.mubr.bf16.vlgmr.msra.gmra.mrb[16].mxu0 %v5796_v60  ;;  %v5111_v60 = vld [vmem:[%s5682_s29 + $0x3d4] ss:$24 sps:$4 sm:$0xff]   ;;  %s5946_s29 = scalar_lea.vmem %s6213_s13, %s4779_s26 }
 0xa4f   : > { %2958 = vmatpush1.bf16.msra.mxu0 %v5097_v11  ;;  %2989 = vmatprep.mubr.bf16.mxu0 %v5341_v2  ;;  %v5121_v50 = vld [vmem:[%s5946_s29] ss:$8 sps:$4 sm:$0xff]   ;;  %v5123_v56 = vld [vmem:[%s5946_s29 + $0x4] ss:$8 sps:$4 sm:$0xff]   ;;  %v5126_v53 = vld [vmem:[%s5946_s29 + $0x14] ss:$8 sps:$4 sm:$0xff]  }
 0xa50   : > { %2959 = vmatprep.subr.bf16.mxu0 %v5102_v59  ;;  %3666 = vmatprep.subr.bf16.mxu1 %v5123_v56  ;;  %v5124_v58 = vld [vmem:[%s5946_s29 + $0x10] ss:$8 sps:$4 sm:$0xff]   ;;  %v5129_v11 = vld [vmem:[%s5946_s29 + $0x24] ss:$8 sps:$4 sm:$0xff]   ;;  %v5127_v59 = vld [vmem:[%s5946_s29 + $0x20] ss:$8 sps:$4 sm:$0xff]  }
 0xa51   : > { %3667 = vmatpush1.bf16.msra.mxu1 %v5121_v50  ;;  %v5154_v56 = vld [vmem:[%s5946_s29 + $0xb0] ss:$8 sps:$4 sm:$0xff]  }
 0xa52   : > { %3668 = vmatprep.subr.bf16.mxu1 %v5126_v53  ;;  %v5159_v53 = vld [vmem:[%s5946_s29 + $0xc4] ss:$8 sps:$4 sm:$0xff]  }
 0xa53   : > { %2960 = vmatpush1.bf16.msra.mxu0 %v5100_v12  ;;  %v5132_v12 = vld [vmem:[%s5946_s29 + $0x34] ss:$8 sps:$4 sm:$0xff]  }
 0xa54   : > { %2961 = vmatprep.subr.bf16.mxu0 %v5105_v14  ;;  %v5130_v14 = vld [vmem:[%s5946_s29 + $0x30] ss:$8 sps:$4 sm:$0xff]  }
 0xa55   : > { %3669 = vmatpush1.bf16.msra.mxu1 %v5124_v58  ;;  %v5157_v58 = vld [vmem:[%s5946_s29 + $0xc0] ss:$8 sps:$4 sm:$0xff]  }
 0xa56   : > { %3670 = vmatprep.subr.bf16.mxu1 %v5129_v11  ;;  %v5162_v11 = vld [vmem:[%s5946_s29 + $0xd4] ss:$8 sps:$4 sm:$0xff]  }
 0xa57   : > { %2962 = vmatpush1.bf16.msra.mxu0 %v5103_v15  ;;  %v5135_v15 = vld [vmem:[%s5946_s29 + $0x44] ss:$8 sps:$4 sm:$0xff]  }
 0xa58   : > { %2963 = vmatprep.subr.bf16.mxu0 %v5108_v16  ;;  %v5133_v16 = vld [vmem:[%s5946_s29 + $0x40] ss:$8 sps:$4 sm:$0xff]  }
 0xa59   : > { %3671 = vmatpush1.bf16.msra.mxu1 %v5127_v59  ;;  %v5160_v59 = vld [vmem:[%s5946_s29 + $0xd0] ss:$8 sps:$4 sm:$0xff]  }
 0xa5a   : > { %3672 = vmatprep.subr.bf16.mxu1 %v5132_v12  ;;  %v5165_v12 = vld [vmem:[%s5946_s29 + $0xe4] ss:$8 sps:$4 sm:$0xff]  }
 0xa5b   : > { %2964 = vmatpush1.bf16.msra.mxu0 %v5106_v17  ;;  %v5138_v17 = vld [vmem:[%s5946_s29 + $0x54] ss:$8 sps:$4 sm:$0xff]  }
 0xa5c   : > { %2965 = vmatprep.subr.bf16.mxu0 %v5111_v60  ;;  %v5136_v60 = vld [vmem:[%s5946_s29 + $0x50] ss:$8 sps:$4 sm:$0xff]  }
 0xa5d   : > { %3673 = vmatpush1.bf16.msra.mxu1 %v5130_v14  ;;  %v5163_v14 = vld [vmem:[%s5946_s29 + $0xe0] ss:$8 sps:$4 sm:$0xff]  }
 0xa5e   : > { %3674 = vmatprep.subr.bf16.mxu1 %v5135_v15  ;;  %v5168_v15 = vld [vmem:[%s5946_s29 + $0xf4] ss:$8 sps:$4 sm:$0xff]  }
 0xa5f   : > { %2966 = vmatpush1.bf16.msra.mxu0 %v5109_v18  ;;  %v5141_v18 = vld [vmem:[%s5946_s29 + $0x64] ss:$8 sps:$4 sm:$0xff]  }
 0xa60   : > { %2967 = vmatprep.subr.bf16.mxu0 %v5114_v19  ;;  %v5139_v19 = vld [vmem:[%s5946_s29 + $0x60] ss:$8 sps:$4 sm:$0xff]  }
 0xa61   : > { %3675 = vmatpush1.bf16.msra.mxu1 %v5133_v16  ;;  %v5166_v16 = vld [vmem:[%s5946_s29 + $0xf0] ss:$8 sps:$4 sm:$0xff]  }
 0xa62   : > { %3676 = vmatprep.subr.bf16.mxu1 %v5138_v17  ;;  %v5171_v17 = vld [vmem:[%s5946_s29 + $0x104] ss:$8 sps:$4 sm:$0xff]  }
 0xa63   : > { %2968 = vmatpush1.bf16.msra.mxu0 %v5112_v21  ;;  %v5144_v21 = vld [vmem:[%s5946_s29 + $0x74] ss:$8 sps:$4 sm:$0xff]  }
 0xa64   : > { %2969 = vmatprep.subr.bf16.mxu0 %v5117_v22  ;;  %v5142_v22 = vld [vmem:[%s5946_s29 + $0x70] ss:$8 sps:$4 sm:$0xff]  }
 0xa65   : > { %3677 = vmatpush1.bf16.msra.mxu1 %v5136_v60 }
 0xa66   : > { %3678 = vmatprep.subr.bf16.mxu1 %v5141_v18 }
 0xa67   : > { %2970 = vmatpush1.bf16.msra.mxu0 %v5115_v23  ;;  %v5147_v23 = vld [vmem:[%s5946_s29 + $0x84] ss:$8 sps:$4 sm:$0xff]  }
 0xa68   : > { %2971 = vmatprep.subr.bf16.mxu0 %v5120_v24  ;;  %v5145_v24 = vld [vmem:[%s5946_s29 + $0x80] ss:$8 sps:$4 sm:$0xff]  }
 0xa69   : > { %3679 = vmatpush1.bf16.msra.mxu1 %v5139_v19 }
 0xa6a   : > { %3680 = vmatprep.subr.bf16.mxu1 %v5144_v21 }
 0xa6b   : > { %2972 = vmatpush1.bf16.msra.mxu0 %v5118_v25  ;;  %v5150_v25 = vld [vmem:[%s5946_s29 + $0x94] ss:$8 sps:$4 sm:$0xff]  }
 0xa6c   : > { %3939 = vmatprep.subr.bf16.mxu0 %v5341_v2 }
 0xa6d   : > { %3681 = vmatpush1.bf16.msra.mxu1 %v5142_v22 }
 0xa6e   : > { %2990 = vmatmul.mubr.bf16.vlgmr.msra.gmra.mrb[16].mxu0 %v5838_v34  ;;  %3682 = vmatprep.subr.bf16.mxu1 %v5147_v23 }
 0xa71   : > { %3683 = vmatpush1.bf16.msra.mxu1 %v5145_v24 }
 0xa72   : > { %3684 = vmatprep.subr.bf16.mxu1 %v5150_v25 }
 0xae1   : > { %v2819_v26 = vpop.f32.mrb[12].mxu0  ;;  %v2905_v27 = vpop.f32.mrb[4].mxu1 }
 0xae2   : > { %v2821_v28 = vpop.f32.mrb[13].mxu0  ;;  %v2907_v29 = vpop.f32.mrb[5].mxu1  ;;  %v5899_v36 = vadd.f32 %v2819_v26, %v1995_v1  ;;  %v5910_v41 = vadd.f32 %v2905_v27, %v2003_v37  ;;  %v5148_v26 = vld [vmem:[%s5946_s29 + $0x90] ss:$8 sps:$4 sm:$0xff]   ;;  %v5153_v27 = vld [vmem:[%s5946_s29 + $0xa4] ss:$8 sps:$4 sm:$0xff]  }
 0xae3   : > { %v2823_v30 = vpop.f32.mrb[14].mxu0  ;;  %v2909_v31 = vpop.f32.mrb[6].mxu1  ;;  %v5901_v34 = vadd.f32 %v2821_v28, %v1999_v10  ;;  %v5923_v48 = vadd.f32 %v2907_v29, %v2007_v42  ;;  %3685 = vmatpush1.bf16.msra.mxu1 %v5148_v26  ;;  %v5151_v28 = vld [vmem:[%s5946_s29 + $0xa0] ss:$8 sps:$4 sm:$0xff]  }
 0xae4   : > { %v2825_v32 = vpop.f32.mrb[15].mxu0  ;;  %v2911_v33 = vpop.f32.mrb[7].mxu1  ;;  %v5904_v38 = vadd.f32 %v2823_v30, %v1995_v1  ;;  %v5917_v45 = vadd.f32 %v2909_v31, %v2003_v37  ;;  %3686 = vmatprep.subr.bf16.mxu1 %v5153_v27 }
 0xae5   : > { %v5906_v39 = vadd.f32 %v2825_v32, %v1999_v10  ;;  %v3000_v40 = vadd.f32 %v5901_v34, %v5899_v36  ;;  %v5927_v52 = vadd.f32 %v2911_v33, %v2007_v42 }
 0xae7   : > { %v3007_v43 = vadd.f32 %v5906_v39, %v5904_v38  ;;  %v3001_v44 = vadd.f32 %v5910_v41, %v3000_v40  ;;  %3687 = vmatpush1.bf16.msra.mxu1 %v5151_v28 }
 0xae9   : > { %v3008_v49 = vadd.f32 %v5917_v45, %v3007_v43  ;;  %v3002_v3 = vadd.f32 %v5923_v48, %v3001_v44 }
 0xaeb   : > { %v3009_v8 = vadd.f32 %v5927_v52, %v3008_v49 }
 0xb41   : > { %v2991_v51 = vpop.f32.mrb[16].mxu0 }
 0xb42   : > { %v5929_v54 = vadd.f32 %v2991_v51, %v2011_v62  ;;  %v2993_v55 = vpop.f32.mrb[17].mxu0 }
 0xb43   : > { %v5931_v57 = vadd.f32 %v2993_v55, %v2015_v46  ;;  %v2995_v63 = vpop.f32.mrb[18].mxu0 }
 0xb44   : > { %v3003_v5 = vadd.f32 %v5929_v54, %v3002_v3  ;;  %v5935_v20 = vadd.f32 %v2995_v63, %v2011_v62  ;;  %v2997_v0 = vpop.f32.mrb[19].mxu0 }
 0xb45   : > { %v5937_v61 = vadd.f32 %v2997_v0, %v2015_v46 }
 0xb46   : > { %v3010_v4 = vadd.f32 %v5935_v20, %v3009_v8  ;;  %v3004_v6 = vadd.f32 %v5931_v57, %v3003_v5 }
 0xb48   : > { %3005 = vadd.xlane.f32.xlu1 %v3004_v6  ;;  %v3011_v47 = vadd.f32 %v5937_v61, %v3010_v4 }
 0xb4a   : > { %3012 = vadd.xlane.f32.xlu0 %v3011_v47 }
 0xbd5   : > { %v3006_v29 = vpop.xlane.xlu1 %3005 }
 0xbd6   : > { %v3014_v30 = vmul.f32 0.0013020834, %v3006_v29 }
 0xbd7   : > { %v3013_v31 = vpop.xlane.xlu0 %3012 }
 0xbd8   : > { %v3015_v32 = vmul.f32 0.0013020834, %v3013_v31  ;;  %v5971_v33 = vsub.f32 %v5899_v36, %v3014_v30  ;;  %v5974_v35 = vsub.f32 %v5901_v34, %v3014_v30  ;;  %v5977_v1 = vsub.f32 %v5910_v41, %v3014_v30 }
 0xbd9   : > { %v5980_v10 = vsub.f32 %v5923_v48, %v3014_v30  ;;  %v5993_v34 = vsub.f32 %v5929_v54, %v3014_v30 }
 0xbda   : > { %v3028_v37 = vmul.f32 %v5971_v33, %v5971_v33  ;;  %v3029_v40 = vmul.f32 %v5974_v35, %v5974_v35  ;;  %v5987_v42 = vsub.f32 %v5904_v38, %v3015_v32  ;;  %v5990_v36 = vsub.f32 %v5906_v39, %v3015_v32 }
 0xbdb   : > { %v3030_v41 = vmul.f32 %v5977_v1, %v5977_v1  ;;  %v5998_v44 = vsub.f32 %v5917_v45, %v3015_v32  ;;  %v3025_v62 = vsub.f32 %v5927_v52, %v3015_v32  ;;  %v3021_v39 = vsub.f32 %v5931_v57, %v3014_v30 }
 0xbdc   : > { %v3040_v43 = vadd.f32 %v3029_v40, %v3028_v37  ;;  %v3034_v46 = vmul.f32 %v5987_v42, %v5987_v42  ;;  %v3035_v38 = vmul.f32 %v5990_v36, %v5990_v36  ;;  %v3031_v48 = vmul.f32 %v5980_v10, %v5980_v10 }
 0xbdd   : > { %v3026_v51 = vsub.f32 %v5935_v20, %v3015_v32  ;;  %v3036_v45 = vmul.f32 %v5998_v44, %v5998_v44  ;;  %v3032_v52 = vmul.f32 %v5993_v34, %v5993_v34  ;;  %v3027_v55 = vsub.f32 %v5937_v61, %v3015_v32  ;;  %v5156_v61 = vld [vmem:[%s5946_s29 + $0xb4] ss:$8 sps:$4 sm:$0xff]  }
 0xbde   : > { %v3041_v49 = vadd.f32 %v3040_v43, %v3030_v41  ;;  %v3047_v3 = vadd.f32 %v3035_v38, %v3034_v46  ;;  %v3037_v63 = vmul.f32 %v3025_v62, %v3025_v62  ;;  %v3033_v8 = vmul.f32 %v3021_v39, %v3021_v39  ;;  %3688 = vmatprep.subr.bf16.mxu1 %v5156_v61  ;;  %v5169_v41 = vld [vmem:[%s5946_s29 + $0x100] ss:$8 sps:$4 sm:$0xff]   ;;  %v5177_v38 = vld [vmem:[%s5946_s29 + $0x124] ss:$8 sps:$4 sm:$0xff]  }
 0xbdf   : > { %v3038_v20 = vmul.f32 %v3026_v51, %v3026_v51  ;;  %v3039_v6 = vmul.f32 %v3027_v55, %v3027_v55  ;;  %3689 = vmatpush1.bf16.msra.mxu1 %v5154_v56  ;;  %v5207_v61 = vld [vmem:[%s5946_s29 + $0x1c4] ss:$8 sps:$4 sm:$0xff]   ;;  %v5205_v56 = vld [vmem:[%s5946_s29 + $0x1c0] ss:$8 sps:$4 sm:$0xff]  }
 0xbe0   : > { %v3042_v54 = vadd.f32 %v3041_v49, %v3031_v48  ;;  %v3048_v57 = vadd.f32 %v3047_v3, %v3036_v45  ;;  %3690 = vmatprep.subr.bf16.mxu1 %v5159_v53  ;;  %v5180_v48 = vld [vmem:[%s5946_s29 + $0x134] ss:$8 sps:$4 sm:$0xff]   ;;  %v5178_v49 = vld [vmem:[%s5946_s29 + $0x130] ss:$8 sps:$4 sm:$0xff]   ;;  %v5181_v45 = vld [vmem:[%s5946_s29 + $0x140] ss:$8 sps:$4 sm:$0xff]  }
 0xbe1   : > { %v5186_v3 = vld [vmem:[%s5946_s29 + $0x154] ss:$8 sps:$4 sm:$0xff]  }
 0xbe2   : > { %v3043_v5 = vadd.f32 %v3042_v54, %v3032_v52  ;;  %v3049_v0 = vadd.f32 %v3048_v57, %v3037_v63  ;;  %v5184_v52 = vld [vmem:[%s5946_s29 + $0x150] ss:$8 sps:$4 sm:$0xff]   ;;  %v5189_v54 = vld [vmem:[%s5946_s29 + $0x164] ss:$8 sps:$4 sm:$0xff]   ;;  %v5192_v63 = vld [vmem:[%s5946_s29 + $0x174] ss:$8 sps:$4 sm:$0xff]  }
 0xbe3   : > { %3691 = vmatpush1.bf16.msra.mxu1 %v5157_v58  ;;  %v5190_v57 = vld [vmem:[%s5946_s29 + $0x170] ss:$8 sps:$4 sm:$0xff]   ;;  %v5210_v53 = vld [vmem:[%s5946_s29 + $0x1d4] ss:$8 sps:$4 sm:$0xff]  }
 0xbe4   : > { %v3044_v4 = vadd.f32 %v3043_v5, %v3033_v8  ;;  %v3050_v47 = vadd.f32 %v3049_v0, %v3038_v20  ;;  %3692 = vmatprep.subr.bf16.mxu1 %v5162_v11  ;;  %v5195_v8 = vld [vmem:[%s5946_s29 + $0x184] ss:$8 sps:$4 sm:$0xff]   ;;  %v5193_v5 = vld [vmem:[%s5946_s29 + $0x180] ss:$8 sps:$4 sm:$0xff]   ;;  %v5198_v20 = vld [vmem:[%s5946_s29 + $0x194] ss:$8 sps:$4 sm:$0xff]  }
 0xbe5   : > { %v5196_v0 = vld [vmem:[%s5946_s29 + $0x190] ss:$8 sps:$4 sm:$0xff]   ;;  %v5213_v11 = vld [vmem:[%s5946_s29 + $0x1e4] ss:$8 sps:$4 sm:$0xff]  }
 0xbe6   : > { %3045 = vadd.xlane.f32.xlu1 %v3044_v4  ;;  %v3051_v50 = vadd.f32 %v3050_v47, %v3039_v6  ;;  %v5201_v4 = vld [vmem:[%s5946_s29 + $0x1a4] ss:$8 sps:$4 sm:$0xff]   ;;  %v5199_v6 = vld [vmem:[%s5946_s29 + $0x1a0] ss:$8 sps:$4 sm:$0xff]   ;;  %v5204_v47 = vld [vmem:[%s5946_s29 + $0x1b4] ss:$8 sps:$4 sm:$0xff]  }
 0xbe7   : > { %3693 = vmatpush1.bf16.msra.mxu1 %v5160_v59  ;;  %v5208_v58 = vld [vmem:[%s5946_s29 + $0x1d0] ss:$8 sps:$4 sm:$0xff]   ;;  %v5211_v59 = vld [vmem:[%s5946_s29 + $0x1e0] ss:$8 sps:$4 sm:$0xff]  }
 0xbe8   : > { %3052 = vadd.xlane.f32.xlu0 %v3051_v50  ;;  %3694 = vmatprep.subr.bf16.mxu1 %v5165_v12  ;;  %v5202_v50 = vld [vmem:[%s5946_s29 + $0x1b0] ss:$8 sps:$4 sm:$0xff]   ;;  %v5216_v12 = vld [vmem:[%s5946_s29 + $0x1f4] ss:$8 sps:$4 sm:$0xff]  }
 0xbeb   : > { %3695 = vmatpush1.bf16.msra.mxu1 %v5163_v14  ;;  %v5214_v14 = vld [vmem:[%s5946_s29 + $0x1f0] ss:$8 sps:$4 sm:$0xff]  }
 0xbec   : > { %3696 = vmatprep.subr.bf16.mxu1 %v5168_v15  ;;  %v5219_v15 = vld [vmem:[%s5946_s29 + $0x204] ss:$8 sps:$4 sm:$0xff]  }
 0xbef   : > { %3697 = vmatpush1.bf16.msra.mxu1 %v5166_v16  ;;  %v5217_v16 = vld [vmem:[%s5946_s29 + $0x200] ss:$8 sps:$4 sm:$0xff]  }
 0xbf0   : > { %3709 = vmatprep.subr.bf16.mxu1 %v5171_v17  ;;  %v5222_v17 = vld [vmem:[%s5946_s29 + $0x214] ss:$8 sps:$4 sm:$0xff]  }
 0xc73   : > { %v3046_v60 = vpop.xlane.xlu1 %3045 }
 0xc74   : > { %v3054_v18 = vmul.f32 0.0013020834, %v3046_v60  ;;  %v5220_v60 = vld [vmem:[%s5946_s29 + $0x210] ss:$8 sps:$4 sm:$0xff]  }
 0xc75   : > { %v3053_v21 = vpop.xlane.xlu0 %3052 }
 0xc76   : > { %v3056_v19 = vadd.f32 1e-05, %v3054_v18  ;;  %v3055_v22 = vmul.f32 0.0013020834, %v3053_v21  ;;  %v5225_v18 = vld [vmem:[%s5946_s29 + $0x224] ss:$8 sps:$4 sm:$0xff]  }
 0xc77   : > { %v5228_v21 = vld [vmem:[%s5946_s29 + $0x234] ss:$8 sps:$4 sm:$0xff]  }
 0xc78   : > { %5300 = vrsqrt.f32 %v3056_v19  ;;  %v3057_v23 = vadd.f32 1e-05, %v3055_v22  ;;  %v5223_v19 = vld [vmem:[%s5946_s29 + $0x220] ss:$8 sps:$4 sm:$0xff]   ;;  %v5226_v22 = vld [vmem:[%s5946_s29 + $0x230] ss:$8 sps:$4 sm:$0xff]  }
 0xc7a   : > { %5302 = vrsqrt.f32 %v3057_v23  ;;  %v5231_v23 = vld [vmem:[%s5946_s29 + $0x244] ss:$8 sps:$4 sm:$0xff]  }
 0xc82   : > { %v5301_v24 = vpop.eup %5300 }
 0xc83   : > { %v3061_v26 = vmul.f32 %v5301_v24, %v5974_v35  ;;  %v3060_v27 = vmul.f32 %v5301_v24, %v5971_v33  ;;  %v6028_v28 = vmul.f32 %v5301_v24, %v5977_v1  ;;  %v6035_v37 = vmul.f32 %v5301_v24, %v3021_v39  ;;  %v5175_v39 = vld [vmem:[%s5946_s29 + $0x120] ss:$8 sps:$4 sm:$0xff]  }
 0xc84   : > { %v5303_v25 = vpop.eup %5302  ;;  %v6040_v35 = vmul.f32 %v5301_v24, %v5993_v34 }
 0xc85   : > { %v3067_v29 = vmul.f32 %v5303_v25, %v5990_v36  ;;  %v3066_v30 = vmul.f32 %v5303_v25, %v5987_v42  ;;  %v3069_v31 = vmul.f32 %v5303_v25, %v3025_v62  ;;  %v6033_v32 = vmul.f32 %v5303_v25, %v5998_v44  ;;  %v5174_v44 = vld [vmem:[%s5946_s29 + $0x114] ss:$8 sps:$4 sm:$0xff]  }
 0xc86   : > { %v6037_v40 = vmul.f32 %v5303_v25, %v3027_v55  ;;  %v6042_v33 = vmul.f32 %v5303_v25, %v3026_v51  ;;  %v3063_v42 = vmul.f32 %v5301_v24, %v5980_v10  ;;  %v5172_v10 = vld [vmem:[%s5946_s29 + $0x110] ss:$8 sps:$4 sm:$0xff]   ;;  %v5183_v51 = vld [vmem:[%s5946_s29 + $0x144] ss:$8 sps:$4 sm:$0xff]   ;;  %v5187_v55 = vld [vmem:[%s5946_s29 + $0x160] ss:$8 sps:$4 sm:$0xff]  }
 0xc87   : > { %v3073_v1 = vpack.c.bf16 %v3067_v29, %v3061_v26  ;;  %v3072_v36 = vpack.c.bf16 %v3066_v30, %v3060_v27  ;;  %v3074_v43 = vpack.c.bf16 %v6033_v32, %v6028_v28  ;;  %v5229_v24 = vld [vmem:[%s5946_s29 + $0x240] ss:$8 sps:$4 sm:$0xff]   ;;  %v5234_v25 = vld [vmem:[%s5946_s29 + $0x254] ss:$8 sps:$4 sm:$0xff]   ;;  %v5232_v26 = vld [vmem:[%s5946_s29 + $0x250] ss:$8 sps:$4 sm:$0xff]  }
 0xc88   : > { %v3077_v62 = vpack.c.bf16 %v6037_v40, %v6035_v37  ;;  %v3076_v34 = vpack.c.bf16 %v6042_v33, %v6040_v35  ;;  %v3075_v46 = vpack.c.bf16 %v3069_v31, %v3063_v42  ;;  %v5237_v27 = vld [vmem:[%s5946_s29 + $0x264] ss:$8 sps:$4 sm:$0xff]   ;;  %v5235_v28 = vld [vmem:[%s5946_s29 + $0x260] ss:$8 sps:$4 sm:$0xff]   ;;  %v5240_v29 = vld [vmem:[%s5946_s29 + $0x274] ss:$8 sps:$4 sm:$0xff]  }
 0xc89   : > { %3698 = vmatprep.mubr.bf16.mxu1 %v3073_v1  ;;  %v5238_v30 = vld [vmem:[%s5946_s29 + $0x270] ss:$8 sps:$4 sm:$0xff]   ;;  %v5243_v31 = vld [vmem:[%s5946_s29 + $0x284] ss:$8 sps:$4 sm:$0xff]   ;;  %v5241_v32 = vld [vmem:[%s5946_s29 + $0x280] ss:$8 sps:$4 sm:$0xff]  }
 0xc8a   : > { %3699 = vmatmul.mubr.bf16.vlgmr.msra.gmra.mrb[8].mxu1 %v3072_v36  ;;  %v5246_v37 = vld [vmem:[%s5946_s29 + $0x294] ss:$8 sps:$4 sm:$0xff]   ;;  %v5244_v40 = vld [vmem:[%s5946_s29 + $0x290] ss:$8 sps:$4 sm:$0xff]   ;;  %v5249_v1 = vld [vmem:[%s5946_s29 + $0x2a4] ss:$8 sps:$4 sm:$0xff]  }
 0xc8b   : > { %3710 = vmatpush1.bf16.msra.mxu1 %v5169_v41  ;;  %3741 = vmatprep.mubr.bf16.mxu1 %v3075_v46  ;;  %v5247_v41 = vld [vmem:[%s5946_s29 + $0x2a0] ss:$8 sps:$4 sm:$0xff]   ;;  %v5252_v36 = vld [vmem:[%s5946_s29 + $0x2b4] ss:$8 sps:$4 sm:$0xff]   ;;  %v5250_v42 = vld [vmem:[%s5946_s29 + $0x2b0] ss:$8 sps:$4 sm:$0xff]  }
 0xc8c   : > { %3711 = vmatprep.subr.bf16.mxu1 %v5174_v44  ;;  %v5253_v44 = vld [vmem:[%s5946_s29 + $0x2c0] ss:$8 sps:$4 sm:$0xff]   ;;  %v5256_v46 = vld [vmem:[%s5946_s29 + $0x2d0] ss:$8 sps:$4 sm:$0xff]  }
 0xc8f   : > { %3712 = vmatpush1.bf16.msra.mxu1 %v5172_v10  ;;  %v5261_v10 = vld [vmem:[%s5946_s29 + $0x2e4] ss:$8 sps:$4 sm:$0xff]  }
 0xc90   : > { %3713 = vmatprep.subr.bf16.mxu1 %v5177_v38  ;;  %v5259_v38 = vld [vmem:[%s5946_s29 + $0x2e0] ss:$8 sps:$4 sm:$0xff]  }
 0xc93   : > { %3714 = vmatpush1.bf16.msra.mxu1 %v5175_v39  ;;  %v5264_v39 = vld [vmem:[%s5946_s29 + $0x2f4] ss:$8 sps:$4 sm:$0xff]  }
 0xc94   : > { %3715 = vmatprep.subr.bf16.mxu1 %v5180_v48  ;;  %v5262_v48 = vld [vmem:[%s5946_s29 + $0x2f0] ss:$8 sps:$4 sm:$0xff]  }
 0xc97   : > { %3716 = vmatpush1.bf16.msra.mxu1 %v5178_v49  ;;  %v3174_v49 = vld [vmem:[%s910_s25] sm:$0x3] }
 0xc98   : > { %3717 = vmatprep.subr.bf16.mxu1 %v5183_v51  ;;  %v3183_v51 = vrot.slane %v3174_v49, %v5487_v7  ;;  %v5265_v7 = vld [vmem:[%s6136_s27] sm:$0xff]  }
 0xc99   : > { %3940 = vmatpush1.bf16.msra.mxu0 %v5265_v7  ;;  %v5279_v7 = vld [vmem:[%s923_s3 + $0x10] sm:$0xff]  }
 0xc9a   : > { %3941 = vmatprep.subr.bf16.mxu0 %v5341_v2 }
 0xc9b   : > { %3718 = vmatpush1.bf16.msra.mxu1 %v5181_v45  ;;  %v3179_v45 = vrot.slane %v3174_v49, %v5490_v9  ;;  %v5266_v9 = vld [vmem:[%s6136_s27 + $0x8] sm:$0xff]  }
 0xc9c   : > { %3719 = vmatprep.subr.bf16.mxu1 %v5186_v3 }
 0xc9d   : > { %3942 = vmatpush1.bf16.msra.mxu0 %v5266_v9 }
 0xc9e   : > { %3943 = vmatprep.subr.bf16.mxu0 %v5341_v2 }
 0xc9f   : > { %3720 = vmatpush1.bf16.msra.mxu1 %v5184_v52 }
 0xca0   : > { %3721 = vmatprep.subr.bf16.mxu1 %v5189_v54 }
 0xca3   : > { %3722 = vmatpush1.bf16.msra.mxu1 %v5187_v55 }
 0xca4   : > { %3723 = vmatprep.subr.bf16.mxu1 %v5192_v63 }
 0xca7   : > { %3724 = vmatpush1.bf16.msra.mxu1 %v5190_v57 }
 0xca8   : > { %3725 = vmatprep.subr.bf16.mxu1 %v5195_v8 }
 0xcab   : > { %3726 = vmatpush1.bf16.msra.mxu1 %v5193_v5 }
 0xcac   : > { %3727 = vmatprep.subr.bf16.mxu1 %v5198_v20 }
 0xcaf   : > { %3728 = vmatpush1.bf16.msra.mxu1 %v5196_v0  ;;  %v5267_v0 = vld [vmem:[%s6136_s27 + $0x10] sm:$0xff]  }
 0xcb0   : > { %3729 = vmatprep.subr.bf16.mxu1 %v5201_v4  ;;  %3944 = vmatpush1.bf16.msra.mxu0 %v5267_v0  ;;  %v5268_v4 = vld [vmem:[%s6136_s27 + $0x18] sm:$0xff]  }
 0xcb1   : > { %3945 = vmatprep.subr.bf16.mxu0 %v5341_v2 }
 0xcb3   : > { %3730 = vmatpush1.bf16.msra.mxu1 %v5199_v6  ;;  %v5269_v6 = vld [vmem:[%s6136_s27 + $0x20] sm:$0xff]  }
 0xcb4   : > { %3731 = vmatprep.subr.bf16.mxu1 %v5204_v47  ;;  %3946 = vmatpush1.bf16.msra.mxu0 %v5268_v4  ;;  %v5270_v47 = vld [vmem:[%s6136_s27 + $0x28] sm:$0xff]  }
 0xcb5   : > { %3947 = vmatprep.subr.bf16.mxu0 %v5341_v2 }
 0xcb7   : > { %3732 = vmatpush1.bf16.msra.mxu1 %v5202_v50  ;;  %v5271_v50 = vld [vmem:[%s6136_s27 + $0x30] sm:$0xff]  }
 0xcb8   : > { %3733 = vmatprep.subr.bf16.mxu1 %v5207_v61  ;;  %3948 = vmatpush1.bf16.msra.mxu0 %v5269_v6 }
 0xcb9   : > { %3949 = vmatprep.subr.bf16.mxu0 %v5341_v2 }
 0xcbb   : > { %3734 = vmatpush1.bf16.msra.mxu1 %v5205_v56 }
 0xcbc   : > { %3735 = vmatprep.subr.bf16.mxu1 %v5210_v53  ;;  %3950 = vmatpush1.bf16.msra.mxu0 %v5270_v47 }
 0xcbd   : > { %3951 = vmatprep.subr.bf16.mxu0 %v5341_v2 }
 0xcbf   : > { %3736 = vmatpush1.bf16.msra.mxu1 %v5208_v58 }
 0xcc0   : > { %3737 = vmatprep.subr.bf16.mxu1 %v5213_v11  ;;  %3952 = vmatpush1.bf16.msra.mxu0 %v5271_v50 }
 0xcc1   : > { %3953 = vmatprep.subr.bf16.mxu0 %v5341_v2 }
 0xcc3   : > { %3738 = vmatpush1.bf16.msra.mxu1 %v5211_v59 }
 0xcc4   : > { %3739 = vmatprep.subr.bf16.mxu1 %v5216_v12 }
 0xcc7   : > { %3740 = vmatpush1.bf16.msra.mxu1 %v5214_v14 }
 0xcc8   : > { %3752 = vmatprep.subr.bf16.mxu1 %v5219_v15 }
 0xcca   : > { %3742 = vmatmul.mubr.bf16.vlgmr.msra.gmra.mrb[8].mxu1 %v3074_v43  ;;  %v5255_v43 = vld [vmem:[%s5946_s29 + $0x2c4] ss:$8 sps:$4 sm:$0xff]  }
 0xccb   : > { %3753 = vmatpush1.bf16.msra.mxu1 %v5217_v16  ;;  %3784 = vmatprep.mubr.bf16.mxu1 %v3077_v62  ;;  %v5258_v62 = vld [vmem:[%s5946_s29 + $0x2d4] ss:$8 sps:$4 sm:$0xff]  }
 0xccc   : > { %3754 = vmatprep.subr.bf16.mxu1 %v5222_v17 }
 0xccf   : > { %3755 = vmatpush1.bf16.msra.mxu1 %v5220_v60 }
 0xcd0   : > { %3756 = vmatprep.subr.bf16.mxu1 %v5225_v18 }
 0xcd3   : > { %3757 = vmatpush1.bf16.msra.mxu1 %v5223_v19 }
 0xcd4   : > { %3758 = vmatprep.subr.bf16.mxu1 %v5228_v21 }
 0xcd7   : > { %3759 = vmatpush1.bf16.msra.mxu1 %v5226_v22 }
 0xcd8   : > { %3760 = vmatprep.subr.bf16.mxu1 %v5231_v23  ;;  %v5272_v23 = vld [vmem:[%s6136_s27 + $0x38] sm:$0xff]  }
 0xcd9   : > { %3954 = vmatpush1.bf16.msra.mxu0 %v5272_v23 }
 0xcda   : > { %3955 = vmatprep.subr.bf16.mxu0 %v5341_v2 }
 0xcdb   : > { %3761 = vmatpush1.bf16.msra.mxu1 %v5229_v24  ;;  %v5273_v24 = vld [vmem:[%s6136_s27 + $0x40] sm:$0xff]  }
 0xcdc   : > { %3762 = vmatprep.subr.bf16.mxu1 %v5234_v25  ;;  %v5274_v25 = vld [vmem:[%s6136_s27 + $0x48] sm:$0xff]  }
 0xcdd   : > { %3956 = vmatpush1.bf16.msra.mxu0 %v5273_v24 }
 0xcde   : > { %3957 = vmatprep.subr.bf16.mxu0 %v5341_v2 }
 0xcdf   : > { %3763 = vmatpush1.bf16.msra.mxu1 %v5232_v26  ;;  %v5275_v26 = vld [vmem:[%s6136_s27 + $0x50] sm:$0xff]  }
 0xce0   : > { %3764 = vmatprep.subr.bf16.mxu1 %v5237_v27  ;;  %v5276_v27 = vld [vmem:[%s6136_s27 + $0x58] sm:$0xff]  }
 0xce1   : > { %3958 = vmatpush1.bf16.msra.mxu0 %v5274_v25 }
 0xce2   : > { %3959 = vmatprep.subr.bf16.mxu0 %v5341_v2 }
 0xce3   : > { %3765 = vmatpush1.bf16.msra.mxu1 %v5235_v28 }
 0xce4   : > { %3766 = vmatprep.subr.bf16.mxu1 %v5240_v29 }
 0xce5   : > { %3960 = vmatpush1.bf16.msra.mxu0 %v5275_v26 }
 0xce6   : > { %3961 = vmatprep.subr.bf16.mxu0 %v5341_v2 }
 0xce7   : > { %3767 = vmatpush1.bf16.msra.mxu1 %v5238_v30 }
 0xce8   : > { %3768 = vmatprep.subr.bf16.mxu1 %v5243_v31 }
 0xce9   : > { %3962 = vmatpush1.bf16.msra.mxu0 %v5276_v27 }
 0xcea   : > { %4729 = vmatprep.subr.bf16.mxu0 %v5348_v13 }
 0xceb   : > { %3769 = vmatpush1.bf16.msra.mxu1 %v5241_v32 }
 0xcec   : > { %3770 = vmatprep.subr.bf16.mxu1 %v5246_v37 }
 0xcef   : > { %3771 = vmatpush1.bf16.msra.mxu1 %v5244_v40 }
 0xcf0   : > { %3772 = vmatprep.subr.bf16.mxu1 %v5249_v1 }
 0xcf3   : > { %3773 = vmatpush1.bf16.msra.mxu1 %v5247_v41 }
 0xcf4   : > { %3774 = vmatprep.subr.bf16.mxu1 %v5252_v36 }
 0xcf7   : > { %3775 = vmatpush1.bf16.msra.mxu1 %v5250_v42 }
 0xcf8   : > { %3776 = vmatprep.subr.bf16.mxu1 %v5255_v43 }
 0xcfb   : > { %3777 = vmatpush1.bf16.msra.mxu1 %v5253_v44 }
 0xcfc   : > { %3778 = vmatprep.subr.bf16.mxu1 %v5258_v62  ;;  %v4690_v62 = vld [vmem:[%s918_s22] ss:$0 sm:$0xff] }
 0xcff   : > { %3779 = vmatpush1.bf16.msra.mxu1 %v5256_v46 }
 0xd00   : > { %3780 = vmatprep.subr.bf16.mxu1 %v5261_v10 }
 0xd03   : > { %3781 = vmatpush1.bf16.msra.mxu1 %v5259_v38 }
 0xd04   : > { %3782 = vmatprep.subr.bf16.mxu1 %v5264_v39 }
 0xd07   : > { %3783 = vmatpush1.bf16.msra.mxu1 %v5262_v48 }
 0xd0a   : > { %3785 = vmatmul.mubr.bf16.vlgmr.msra.gmra.mrb[8].mxu1 %v3076_v34 }
 0xddd   : > { %v3786_v3 = vpop.f32.mrb[8].mxu1 }
 0xdde   : > { %v3788_v52 = vpop.f32.mrb[9].mxu1  ;;  %v4751_v63 = vadd.f32 %v3786_v3, %v3179_v45 }
 0xddf   : > { %v4752_v54 = vadd.f32 %v3788_v52, %v3183_v51  ;;  %v3790_v55 = vpop.f32.mrb[10].mxu1 }
 0xde0   : > { %v3792_v57 = vpop.f32.mrb[11].mxu1  ;;  %v4753_v33 = vadd.f32 %v3790_v55, %v3179_v45 }
 0xde1   : > { %v4754_v8 = vadd.f32 %v3792_v57, %v3183_v51  ;;  %v3795_v35 = vsel %vm1418_vm3, %v4752_v54, 0.0 }
 0xde2   : > { %v3796_v34 = vadd.f32 %v4751_v63, %v3795_v35 }
 0xde3   : > { %v3799_v5 = vsel %vm1418_vm3, %v4754_v8, 0.0 }
 0xde4   : > { %3797 = vadd.xlane.f32.xlu1 %v3796_v34  ;;  %v3800_v20 = vadd.f32 %v4753_v33, %v3799_v5  ;;  %v5277_v5 = vld [vmem:[%s923_s3] sm:$0xff]  }
 0xde6   : > { %3801 = vadd.xlane.f32.xlu0 %v3800_v20  ;;  %v5278_v20 = vld [vmem:[%s923_s3 + $0x8] sm:$0xff]  }
 0xe71   : > { %v3798_v61 = vpop.xlane.xlu1 %3797 }
 0xe72   : > { %v3803_v56 = vmul.f32 0.0052083335, %v3798_v61 }
 0xe73   : > { %v3802_v53 = vpop.xlane.xlu0 %3801 }
 0xe74   : > { %v3805_v58 = vsub.f32 %v4751_v63, %v3803_v56  ;;  %v3806_v11 = vsub.f32 %v4752_v54, %v3803_v56  ;;  %v3804_v59 = vmul.f32 0.0052083335, %v3802_v53 }
 0xe76   : > { %v3807_v12 = vsub.f32 %v4753_v33, %v3804_v59  ;;  %v3808_v14 = vsub.f32 %v4754_v8, %v3804_v59  ;;  %v3809_v15 = vmul.f32 %v3805_v58, %v3805_v58  ;;  %v3810_v16 = vmul.f32 %v3806_v11, %v3806_v11 }
 0xe78   : > { %v3813_v17 = vsel %vm1418_vm3, %v3810_v16, 0.0  ;;  %v3811_v60 = vmul.f32 %v3807_v12, %v3807_v12  ;;  %v3812_v18 = vmul.f32 %v3808_v14, %v3808_v14 }
 0xe79   : > { %v3814_v19 = vadd.f32 %v3813_v17, %v3809_v15 }
 0xe7a   : > { %v3817_v21 = vsel %vm1418_vm3, %v3812_v18, 0.0 }
 0xe7b   : > { %3815 = vadd.xlane.f32.xlu1 %v3814_v19  ;;  %v3818_v22 = vadd.f32 %v3817_v21, %v3811_v60 }
 0xe7d   : > { %3819 = vadd.xlane.f32.xlu0 %v3818_v22 }
 0xf08   : > { %v3816_v28 = vpop.xlane.xlu1 %3815 }
 0xf09   : > { %v3821_v29 = vmul.f32 0.0052083335, %v3816_v28 }
 0xf0a   : > { %v3820_v30 = vpop.xlane.xlu0 %3819 }
 0xf0b   : > { %v3823_v31 = vadd.f32 1e-05, %v3821_v29  ;;  %v3822_v32 = vmul.f32 0.0052083335, %v3820_v30 }
 0xf0d   : > { %5304 = vrsqrt.f32 %v3823_v31  ;;  %v3824_v37 = vadd.f32 1e-05, %v3822_v32 }
 0xf0f   : > { %5306 = vrsqrt.f32 %v3824_v37 }
 0xf17   : > { %v5305_v40 = vpop.eup %5304 }
 0xf18   : > { %v3828_v41 = vmul.f32 %v5305_v40, %v3806_v11  ;;  %v3827_v42 = vmul.f32 %v5305_v40, %v3805_v58 }
 0xf19   : > { %v5307_v1 = vpop.eup %5306 }
 0xf1a   : > { %v3830_v36 = vmul.f32 %v5307_v1, %v3808_v14  ;;  %v3829_v43 = vmul.f32 %v5307_v1, %v3807_v12 }
 0xf1c   : > { %v3832_v44 = vpack.c.bf16 %v3830_v36, %v3828_v41  ;;  %v3831_v2 = vpack.c.bf16 %v3829_v43, %v3827_v42 }
 0xf1e   : > { %4703 = vmatprep.mubr.msk.bf16.mxu0 %vm1418_vm3, %v3832_v44 }
 0xf1f   : > { %3972 = vmatmul.mubr.bf16.vlgmr.msra.gmra.mrb[20].mxu0 %v3831_v2 }
 0xf20   : > { %4735 = vmatprep.mubr.msk.bf16.mxu0 %vm5349_vm2, %v5348_v13  ;;  %4730 = vmatpush3.bf16.msra.mxu0 %v5277_v5 }
 0xf21   : > { %4731 = vmatprep.subr.bf16.mxu0 %v5348_v13 }
 0xf24   : > { %4732 = vmatpush3.bf16.msra.mxu0 %v5278_v20 }
 0xf25   : > { %4733 = vmatprep.subr.bf16.mxu0 %v5348_v13  ;;  %v4704_v13 = vld [vmem:[%s926_s28] ss:$0 sm:$0xff] }
 0xf28   : > { %4734 = vmatpush3.bf16.msra.mxu0 %v5279_v7 }
 0xff2   : > { %v3973_v46 = vpop.f32.mrb[20].mxu0 }
 0xff3   : > { %v3974_v10 = vadd.f32 %v4690_v62, %v3973_v46  ;;  %v3975_v38 = vpop.f32.mrb[21].mxu0 }
 0xff4   : > { %v3976_v39 = vpop.f32.mrb[22].mxu0 }
 0xff5   : > { %v3977_v48 = vadd.f32 %v4690_v62, %v3976_v39  ;;  %v3978_v49 = vpop.f32.mrb[23].mxu0  ;;  %v3981_v51 = vsel %vm3980_vm4, %v3974_v10, 0.0 }
 0xff6   : > { %3982 = vadd.xlane.f32.xlu1 %v3981_v51 }
 0xff7   : > { %v3984_v45 = vsel %vm3980_vm4, %v3977_v48, 0.0 }
 0xff8   : > { %3985 = vadd.xlane.f32.xlu0 %v3984_v45 }
0x1083   : > { %v3983_v3 = vpop.xlane.xlu1 %3982 }
0x1084   : > { %v3987_v52 = vmul.f32 0.020833334, %v3983_v3 }
0x1085   : > { %v3986_v54 = vpop.xlane.xlu0 %3985 }
0x1086   : > { %v3989_v55 = vsub.f32 %v3974_v10, %v3987_v52  ;;  %v3988_v63 = vmul.f32 0.020833334, %v3986_v54 }
0x1088   : > { %v3990_v57 = vsub.f32 %v3977_v48, %v3988_v63  ;;  %v3991_v8 = vmul.f32 %v3989_v55, %v3989_v55 }
0x108a   : > { %v3993_v35 = vsel %vm3980_vm4, %v3991_v8, 0.0  ;;  %v3992_v33 = vmul.f32 %v3990_v57, %v3990_v57 }
0x108b   : > { %3994 = vadd.xlane.f32.xlu1 %v3993_v35 }
0x108c   : > { %v3996_v34 = vsel %vm3980_vm4, %v3992_v33, 0.0 }
0x108d   : > { %3997 = vadd.xlane.f32.xlu0 %v3996_v34 }
0x1118   : > { %v3995_v9 = vpop.xlane.xlu1 %3994 }
0x1119   : > { %v3999_v0 = vmul.f32 0.020833334, %v3995_v9 }
0x111a   : > { %v3998_v4 = vpop.xlane.xlu0 %3997 }
0x111b   : > { %v4001_v6 = vadd.f32 1e-05, %v3999_v0  ;;  %v4000_v47 = vmul.f32 0.020833334, %v3998_v4 }
0x111d   : > { %5308 = vrsqrt.f32 %v4001_v6  ;;  %v4002_v50 = vadd.f32 1e-05, %v4000_v47 }
0x111f   : > { %5310 = vrsqrt.f32 %v4002_v50 }
0x1127   : > { %v5309_v61 = vpop.eup %5308 }
0x1128   : > { %v4005_v53 = vmul.f32 %v5309_v61, %v3989_v55 }
0x1129   : > { %v5311_v56 = vpop.eup %5310 }
0x112a   : > { %v4006_v58 = vmul.f32 %v5311_v56, %v3990_v57 }
0x112c   : > { %v4007_v11 = vpack.c.bf16 %v4006_v58, %v4005_v53 }
0x112e   : > { %4736 = vmatmul.mubr.msk.bf16.vlgmr.msra.gmra.mrb[24].mxu0 %vm3980_vm4, %v4007_v11 }
0x1201   : > { %v4076_v59 = vpop.f32.mrb[24].mxu0 }
0x1202   : > { %v4077_v12 = vadd.f32 %v4704_v13, %v4076_v59  ;;  %v4737_v14 = vpop.f32.mrb[25].mxu0 }
0x1203   : > { %v4079_v15 = vpop.f32.mrb[26].mxu0 }
0x1204   : > { %5312 = vtanh.f32 %v4077_v12  ;;  %v4080_v16 = vadd.f32 %v4704_v13, %v4079_v15  ;;  %v4738_v17 = vpop.f32.mrb[27].mxu0 }
0x1206   : > { %5314 = vtanh.f32 %v4080_v16 }
0x120e   : > { %v5313_v60 = vpop.eup %5312 }
0x120f   : > { %4086 = vst.msk [vmem:[%s935_s24] sm:$0xff] %vm4085_vm5, %v5313_v60 }
0x1210   : > { %v5315_v18 = vpop.eup %5314 }
0x1211   : > { %4087 = vst.msk [vmem:[%s935_s24 + $0x8] sm:$0xff] %vm4085_vm5, %v5315_v18 }
0x1212 PF: > { %s29_s20 = sadd.s32 1, %s5338_s20   ;;  %s6229_s0 = smov %s5334_s30 }
0x1213   : > { %p26_p5 = scmp.ge.s32.totalorder %s29_s20, 4   ;;  %s6230_s30 = smov %s6232_s21 }
0x1215   :  { %28 = sbr.rel (!%p26_p5) target bundleno = 5 (0x5), region = 180 }

</bundles_post_ra>
